<compile_context>
chip_gen: v5e
topology: v5e:2x2
jax: 0.10.0
libtpu: 0.0.40
codegen_flags: <defaults>
</compile_context>

<pallas_src>
import math
from functools import partial

import jax
import jax.numpy as jnp
from jax.experimental import pallas as pl
from jax.experimental.pallas import tpu as pltpu

NEG_BIG = -1e30
LRELU_SLOPE = 0.01       # nn.LeakyReLU default negative_slope
LN_EPS = 1e-5            # nn.LayerNorm default eps


def _layernorm(x, gamma, beta):
    # Single-pass statistics: mean and mean-of-squares are independent reduces.
    mu = jnp.mean(x, axis=-1, keepdims=True)
    ms = jnp.mean(x * x, axis=-1, keepdims=True)
    var = jnp.maximum(ms - mu * mu, 0.0)
    return (x - mu) * jax.lax.rsqrt(var + LN_EPS) * gamma + beta


def _leaky_relu(x):
    return jnp.where(x > 0, x, LRELU_SLOPE * x)


# --------------------------------------------------------------------------- #
# Kernel 1: LocalSparseAttention stack on a compact per-window layout.
# x is [G, w, H] (G = batch * num_windows); windows are fully independent, so
# all local_num layers are applied per window block. Gridded over window
# groups ("parallel" -> both TensorCores on v7x).
# --------------------------------------------------------------------------- #
def _local_stack_kernel(x_ref, wqkv_ref, bqkv_ref, lng_ref, lnb_ref, o_ref,
                        *, top_k):
    f32, bf16 = jnp.float32, jnp.bfloat16
    local_num, H, _ = wqkv_ref.shape
    Gb, w, _ = x_ref.shape
    inv_sqrt_h = 1.0 / math.sqrt(H)

    col = jax.lax.broadcasted_iota(jnp.int32, (Gb, w, w), 2)
    x = x_ref[...]                                            # [Gb, w, H] f32
    for layer in range(local_num):
        xb = x.astype(bf16)
        # Fused QKV projection: one batched GEMM, q/k/v sliced from the lanes.
        w_b = jnp.broadcast_to(wqkv_ref[layer][None], (Gb, H, 3 * H))
        qkv = jnp.einsum('gwh,ghd->gwd', xb, w_b,
                         preferred_element_type=f32) + bqkv_ref[layer]
        q = qkv[:, :, :H]
        k = qkv[:, :, H:2 * H]
        v = qkv[:, :, 2 * H:]

        # Compact per-window scores: [Gb, w, w] only (no dense [rows, rows]).
        s = jnp.einsum('gqd,gkd->gqk', q.astype(bf16), k.astype(bf16),
                       preferred_element_type=f32) * inv_sqrt_h

        # Exact per-row top-k; ties resolved toward the lower column index.
        sel = jnp.zeros_like(s, dtype=jnp.bool_)
        t = s
        for _ in range(top_k):
            rmax = jnp.max(t, axis=-1, keepdims=True)
            first = jnp.min(jnp.where(t == rmax, col, w), axis=-1, keepdims=True)
            knock = col == first
            sel = jnp.logical_or(sel, knock)
            t = jnp.where(knock, NEG_BIG, t)

        smax = jnp.max(jnp.where(sel, s, NEG_BIG), axis=-1, keepdims=True)
        p = jnp.where(sel, jnp.exp(s - smax), 0.0)
        wgt = p * pl.reciprocal(jnp.sum(p, axis=-1, keepdims=True), approx=True)
        ctx = jnp.einsum('gqk,gkd->gqd', wgt.astype(bf16), v.astype(bf16),
                         preferred_element_type=f32)          # [Gb, w, H]
        x = _layernorm(_leaky_relu(ctx) + x, lng_ref[layer], lnb_ref[layer])
        # nn.Dropout between local layers: identity at inference time.
    o_ref[...] = x


# --------------------------------------------------------------------------- #
# Kernel 2: nn.TransformerEncoderLayer (post-norm, ReLU FFN) + module-level
# LeakyReLU/LayerNorm. batch_first=False in the reference => attention runs
# over the original batch axis (length L = B) independently for each of the
# N positions. Rows are laid out (batch a, position n) with the per-batch
# stride padded to n_pad (multiple of 8) so every slice is sublane aligned.
# --------------------------------------------------------------------------- #
def _encoder_kernel(comb_ref, wqkv_ref, bqkv_ref, eh_ref, eht_ref,
                    wo_ref, bo_ref, g1_ref, b1_ref, w1_ref, bf1_ref,
                    w2_ref, bf2_ref, g2_ref, b2_ref, gf_ref, bf_ref,
                    o_ref, *, L, n_pad):
    f32, bf16 = jnp.float32, jnp.bfloat16
    H = comb_ref.shape[1]
    nh = eh_ref.shape[1]
    dh = H // nh
    head_scale = 1.0 / math.sqrt(dh)

    comb = comb_ref[...]                                      # [L*n_pad, H]
    cb = comb.astype(bf16)
    # Fused QKV projection over all rows (one tall GEMM).
    qkv = jnp.dot(cb, wqkv_ref[...], preferred_element_type=f32) + bqkv_ref[...]
    q2, k2, v2 = qkv[:, :H], qkv[:, H:2 * H], qkv[:, 2 * H:]

    k_st = jnp.stack([k2[b * n_pad:(b + 1) * n_pad, :] for b in range(L)], axis=0)
    v_st = jnp.stack([v2[b * n_pad:(b + 1) * n_pad, :] for b in range(L)], axis=0)
    eh_b = jnp.broadcast_to(eh_ref[...][None], (L, H, nh))    # bf16 one-hot
    eht_b = jnp.broadcast_to(eht_ref[...][None], (L, nh, H))  # bf16 one-hot^T

    ctx_blocks = []
    for a in range(L):
        qa = q2[a * n_pad:(a + 1) * n_pad, :]                 # [n_pad, H]
        # One batched bf16 GEMM over all key batches b (instead of L matmuls).
        qk = (qa[None, :, :] * k_st).astype(bf16)             # [L, n_pad, H]
        sc = jnp.einsum('bnh,bhm->bnm', qk, eh_b,
                        preferred_element_type=f32) * head_scale
        m = jnp.max(sc, axis=0, keepdims=True)
        e = jnp.exp(sc - m)
        wgt = e * pl.reciprocal(jnp.sum(e, axis=0, keepdims=True), approx=True)
        wfull = jnp.einsum('bnm,bmh->bnh', wgt.astype(bf16), eht_b,
                           preferred_element_type=f32)        # [L, n_pad, H]
        ctx_blocks.append(jnp.sum(wfull * v_st, axis=0))      # [n_pad, H]
    ctx = jnp.concatenate(ctx_blocks, axis=0)                 # [L*n_pad, H]

    attn = jnp.dot(ctx.astype(bf16), wo_ref[...],
                   preferred_element_type=f32) + bo_ref[...]
    y = _layernorm(comb + attn, g1_ref[...], b1_ref[...])
    h = jnp.maximum(
        jnp.dot(y.astype(bf16), w1_ref[...], preferred_element_type=f32)
        + bf1_ref[...], 0.0)
    ff = jnp.dot(h.astype(bf16), w2_ref[...],
                 preferred_element_type=f32) + bf2_ref[...]
    z = _layernorm(y + ff, g2_ref[...], b2_ref[...])
    # Module-level LeakyReLU + final LayerNorm.
    o_ref[...] = _layernorm(_leaky_relu(z), gf_ref[...], bf_ref[...])


# --------------------------------------------------------------------------- #
# Wrapper: two pallas_calls; pad/reshape/CLS-prepend run as cheap XLA ops.
# --------------------------------------------------------------------------- #
def global_local_enhanced_module(x, cls_token, params, *, seq_len, num_windows,
                                 sparsity_threshold):
    B, S, H = x.shape
    assert S == seq_len
    w = max(2, seq_len // num_windows)
    top_k = min(w, max(1, int(w * sparsity_threshold)))
    Sp = S + 1
    assert Sp % w == 0, \
        "reference module requires (seq_len + 1) divisible by window_size"
    NW = Sp // w
    G = B * NW

    loc, enc = params["local"], params["encoder"]

    # ------------- stage 1: local sparse attention stack (per window) -------
    xw = jnp.pad(x, ((0, 0), (0, 1), (0, 0))).reshape(G, w, H)
    nprog = 2 if (G % 2 == 0 and G >= 2) else 1   # 2 parallel programs for v7x
    Gb = G // nprog

    def full_spec(arr):
        nd = arr.ndim
        return pl.BlockSpec(arr.shape, lambda *args, _nd=nd: (0,) * _nd)

    local_out = pl.pallas_call(
        partial(_local_stack_kernel, top_k=top_k),
        out_shape=jax.ShapeDtypeStruct((G, w, H), jnp.float32),
        grid=(nprog,),
        in_specs=[pl.BlockSpec((Gb, w, H), lambda i: (i, 0, 0)),
                  full_spec(loc["w_qkv"]), full_spec(loc["b_qkv"]),
                  full_spec(loc["ln_g"]), full_spec(loc["ln_b"])],
        out_specs=pl.BlockSpec((Gb, w, H), lambda i: (i, 0, 0)),
        compiler_params=pltpu.CompilerParams(
            dimension_semantics=("parallel",),
            vmem_limit_bytes=32 * 1024 * 1024),
    )(xw, loc["w_qkv"], loc["b_qkv"], loc["ln_g"], loc["ln_b"])

    # Drop the zero-pad row, prepend CLS, pad the per-batch row stride to a
    # multiple of 8 so every in-kernel per-batch slice is sublane aligned.
    local_seq = local_out.reshape(B, Sp, H)[:, :S, :]
    combined = jnp.concatenate([cls_token[:, None, :], local_seq], axis=1)
    N = S + 1
    n_pad = ((N + 7) // 8) * 8
    comb2d = jnp.pad(combined, ((0, 0), (0, n_pad - N), (0, 0))).reshape(B * n_pad, H)

    # ------------- stage 2: transformer encoder layer + final LN ------------
    vmem = pl.BlockSpec(memory_space=pltpu.MemorySpace.VMEM)
    operands = (comb2d,
                enc["w_qkv"], enc["b_qkv"], enc["eh"], enc["eht"],
                enc["wo"], enc["bo"], enc["ln1_g"], enc["ln1_b"],
                enc["w1"], enc["b1"], enc["w2"], enc["b2"],
                enc["ln2_g"], enc["ln2_b"], enc["lnf_g"], enc["lnf_b"])
    out2d = pl.pallas_call(
        partial(_encoder_kernel, L=B, n_pad=n_pad),
        out_shape=jax.ShapeDtypeStruct((B * n_pad, H), jnp.float32),
        in_specs=[vmem] * len(operands),
        out_specs=vmem,
        compiler_params=pltpu.CompilerParams(vmem_limit_bytes=32 * 1024 * 1024),
    )(*operands)
    return out2d.reshape(B, n_pad, H)[:, :N, :]


# --------------------------------------------------------------------------- #
# Deterministic parameter construction (shapes follow the module __init__).
# QKV weights are fused as [in, 3*out] and stored bf16 for the MXU; biases /
# LayerNorm params stay f32. eh/eht are exact one-hot head selectors (bf16).
# --------------------------------------------------------------------------- #
def init_params(key, hidden_size, local_num, num_heads, dim_ff):
    H = hidden_size
    keys = iter(jax.random.split(key, 16))

    def wmat(shape, fan_in):
        return (jax.random.normal(next(keys), shape, jnp.float32)
                / math.sqrt(fan_in)).astype(jnp.bfloat16)

    def vec(shape, fan_in):
        return jax.random.normal(next(keys), shape, jnp.float32) / math.sqrt(fan_in)

    local = dict(
        w_qkv=wmat((local_num, H, 3 * H), H),
        b_qkv=vec((local_num, 1, 3 * H), H),
        ln_g=jnp.ones((local_num, 1, H), jnp.float32),
        ln_b=jnp.zeros((local_num, 1, H), jnp.float32),
    )

    dh = H // num_heads
    head_ids = jnp.arange(H) // dh
    eh = (head_ids[:, None] == jnp.arange(num_heads)[None, :]).astype(jnp.bfloat16)

    encoder = dict(
        num_heads=num_heads,
        w_qkv=wmat((H, 3 * H), H), b_qkv=vec((1, 3 * H), H),
        eh=eh, eht=jnp.transpose(eh),
        wo=wmat((H, H), H), bo=vec((1, H), H),
        ln1_g=jnp.ones((1, H), jnp.float32), ln1_b=jnp.zeros((1, H), jnp.float32),
        w1=wmat((H, dim_ff), H), b1=vec((1, dim_ff), H),
        w2=wmat((dim_ff, H), dim_ff), b2=vec((1, H), dim_ff),
        ln2_g=jnp.ones((1, H), jnp.float32), ln2_b=jnp.zeros((1, H), jnp.float32),
        lnf_g=jnp.ones((1, H), jnp.float32), lnf_b=jnp.zeros((1, H), jnp.float32),
    )
    return dict(local=local, encoder=encoder)


if __name__ == "__main__":
    # Small shapes consistent with the reference module:
    # window_size = max(2, 11 // 3) = 3, (11 + 1) % 3 == 0,
    # dynamic_top_k = max(1, int(3 * 0.7)) = 2.
    B, S, H = 2, 11, 32
    num_windows = 3
    sparsity_threshold = 0.7
    local_num = 2
    num_heads = 8              # nn.TransformerEncoderLayer(nhead=8)
    dim_ff = 2048              # PyTorch default dim_feedforward

    key = jax.random.PRNGKey(0)
    kx, kc, kp = jax.random.split(key, 3)
    x = jax.random.normal(kx, (B, S, H), jnp.float32)
    cls_token = jax.random.normal(kc, (B, H), jnp.float32)
    params = init_params(kp, H, local_num, num_heads, dim_ff)

    out = global_local_enhanced_module(
        x, cls_token, params, seq_len=S, num_windows=num_windows,
        sparsity_threshold=sparsity_threshold)
    out = jax.block_until_ready(out)

    assert out.shape == (B, S + 1, H), out.shape
    assert bool(jnp.all(jnp.isfinite(out)))
    print("KERNEL_OK")
</pallas_src>

<mosaic_0001>
module attributes {stable_mosaic.version = 11 : i64} {
  func.func @_local_stack_kernel(%arg0: i32, %arg1: memref<4x3x32xf32, #tpu.memory_space<vmem>>, %arg2: memref<2x32x96xbf16, #tpu.memory_space<vmem>>, %arg3: memref<2x1x96xf32, #tpu.memory_space<vmem>>, %arg4: memref<2x1x32xf32, #tpu.memory_space<vmem>>, %arg5: memref<2x1x32xf32, #tpu.memory_space<vmem>>, %arg6: memref<4x3x32xf32, #tpu.memory_space<vmem>>) attributes {dimension_semantics = [#tpu.dimension_semantics<parallel>], iteration_bounds = array<i64: 2>, scalar_prefetch = 0 : i64, scratch_operands = 0 : i64, tpu.core_type = #tpu.core_type<tc>, window_params = [{transform_indices = @transform_0, window_bounds = array<i64: 4, 3, 32>}, {pipeline_mode = #tpu.pipeline_mode<synchronous>, transform_indices = @transform_1, window_bounds = array<i64: 2, 32, 96>}, {pipeline_mode = #tpu.pipeline_mode<synchronous>, transform_indices = @transform_2, window_bounds = array<i64: 2, 1, 96>}, {pipeline_mode = #tpu.pipeline_mode<synchronous>, transform_indices = @transform_3, window_bounds = array<i64: 2, 1, 32>}, {pipeline_mode = #tpu.pipeline_mode<synchronous>, transform_indices = @transform_4, window_bounds = array<i64: 2, 1, 32>}, {transform_indices = @transform_5, window_bounds = array<i64: 4, 3, 32>}]} {
    %0 = tpu.iota {dimensions = array<i32: 2>} : vector<4x3x3xi32>
    %c0 = arith.constant 0 : index
    %c0_0 = arith.constant 0 : index
    %c0_1 = arith.constant 0 : index
    %1 = vector.load %arg1[%c0, %c0_0, %c0_1] : memref<4x3x32xf32, #tpu.memory_space<vmem>>, vector<4x3x32xf32>
    %2 = arith.truncf %1 : vector<4x3x32xf32> to vector<4x3x32xbf16>
    %c0_2 = arith.constant 0 : index
    %c0_3 = arith.constant 0 : index
    %c0_4 = arith.constant 0 : index
    %3 = vector.load %arg2[%c0_2, %c0_3, %c0_4] : memref<2x32x96xbf16, #tpu.memory_space<vmem>>, vector<1x32x96xbf16>
    %4 = vector.shape_cast %3 : vector<1x32x96xbf16> to vector<32x96xbf16>
    %5 = vector.shape_cast %4 : vector<32x96xbf16> to vector<1x32x96xbf16>
    %6 = vector.shape_cast %5 : vector<1x32x96xbf16> to vector<1x32x96xbf16>
    %7 = vector.broadcast %6 : vector<1x32x96xbf16> to vector<4x32x96xbf16>
    "tpu.trace_start"() <{level = 10 : i32, message = "gwh,ghd->gwd"}> : () -> ()
    %cst = arith.constant dense<0.000000e+00> : vector<4x3x96xf32>
    %8 = tpu.matmul %2, %7, %cst {dimension_numbers = #tpu.dot_dimension_numbers<[2], [1], [1], [2], [0, 0, 0, 1, 1, 2], [0], [0]>} : vector<4x3x32xbf16>, vector<4x32x96xbf16>, vector<4x3x96xf32> -> vector<4x3x96xf32>
    "tpu.trace_stop"() : () -> ()
    %c0_5 = arith.constant 0 : index
    %c0_6 = arith.constant 0 : index
    %c0_7 = arith.constant 0 : index
    %9 = vector.load %arg3[%c0_5, %c0_6, %c0_7] : memref<2x1x96xf32, #tpu.memory_space<vmem>>, vector<1x1x96xf32>
    %10 = vector.shape_cast %9 : vector<1x1x96xf32> to vector<1x96xf32>
    %11 = vector.shape_cast %10 : vector<1x96xf32> to vector<1x1x96xf32>
    %12 = vector.broadcast %11 : vector<1x1x96xf32> to vector<4x3x96xf32>
    %13 = arith.addf %8, %12 : vector<4x3x96xf32>
    %14 = vector.extract_strided_slice %13 {offsets = [0, 0, 0], sizes = [4, 3, 32], strides = [1, 1, 1]} : vector<4x3x96xf32> to vector<4x3x32xf32>
    %15 = vector.extract_strided_slice %13 {offsets = [0, 0, 32], sizes = [4, 3, 32], strides = [1, 1, 1]} : vector<4x3x96xf32> to vector<4x3x32xf32>
    %16 = vector.extract_strided_slice %13 {offsets = [0, 0, 64], sizes = [4, 3, 32], strides = [1, 1, 1]} : vector<4x3x96xf32> to vector<4x3x32xf32>
    %17 = arith.truncf %14 : vector<4x3x32xf32> to vector<4x3x32xbf16>
    %18 = arith.truncf %15 : vector<4x3x32xf32> to vector<4x3x32xbf16>
    "tpu.trace_start"() <{level = 10 : i32, message = "gqd,gkd->gqk"}> : () -> ()
    %cst_8 = arith.constant dense<0.000000e+00> : vector<4x3x3xf32>
    %19 = tpu.matmul %17, %18, %cst_8 {dimension_numbers = #tpu.dot_dimension_numbers<[2], [2], [1], [1], [0, 0, 0, 1, 1, 1], [0], [0]>} : vector<4x3x32xbf16>, vector<4x3x32xbf16>, vector<4x3x3xf32> -> vector<4x3x3xf32>
    "tpu.trace_stop"() : () -> ()
    %cst_9 = arith.constant 0.176776692 : f32
    %20 = vector.broadcast %cst_9 : f32 to vector<4x3x3xf32>
    %21 = arith.mulf %19, %20 : vector<4x3x3xf32>
    %false = arith.constant false
    %22 = vector.broadcast %false : i1 to vector<4x3x3xi1>
    %cst_10 = arith.constant dense<0xFF800000> : vector<4x3xf32>
    %23 = vector.multi_reduction <maximumf>, %21, %cst_10 [2] : vector<4x3x3xf32> to vector<4x3xf32>
    %24 = vector.shape_cast %23 : vector<4x3xf32> to vector<4x3x1xf32>
    %25 = vector.broadcast %24 : vector<4x3x1xf32> to vector<4x3x3xf32>
    %26 = arith.cmpf oeq, %21, %25 : vector<4x3x3xf32>
    %c3_i32 = arith.constant 3 : i32
    %27 = vector.broadcast %c3_i32 : i32 to vector<4x3x3xi32>
    %28 = arith.select %26, %0, %27 : vector<4x3x3xi1>, vector<4x3x3xi32>
    %cst_11 = arith.constant dense<2147483647> : vector<4x3xi32>
    %29 = vector.multi_reduction <minsi>, %28, %cst_11 [2] : vector<4x3x3xi32> to vector<4x3xi32>
    %30 = vector.shape_cast %29 : vector<4x3xi32> to vector<4x3x1xi32>
    %31 = vector.broadcast %30 : vector<4x3x1xi32> to vector<4x3x3xi32>
    %32 = arith.cmpi eq, %0, %31 : vector<4x3x3xi32>
    %33 = arith.ori %22, %32 : vector<4x3x3xi1>
    %cst_12 = arith.constant -1.000000e+30 : f32
    %34 = vector.broadcast %cst_12 : f32 to vector<4x3x3xf32>
    %35 = arith.select %32, %34, %21 : vector<4x3x3xi1>, vector<4x3x3xf32>
    %cst_13 = arith.constant dense<0xFF800000> : vector<4x3xf32>
    %36 = vector.multi_reduction <maximumf>, %35, %cst_13 [2] : vector<4x3x3xf32> to vector<4x3xf32>
    %37 = vector.shape_cast %36 : vector<4x3xf32> to vector<4x3x1xf32>
    %38 = vector.broadcast %37 : vector<4x3x1xf32> to vector<4x3x3xf32>
    %39 = arith.cmpf oeq, %35, %38 : vector<4x3x3xf32>
    %c3_i32_14 = arith.constant 3 : i32
    %40 = vector.broadcast %c3_i32_14 : i32 to vector<4x3x3xi32>
    %41 = arith.select %39, %0, %40 : vector<4x3x3xi1>, vector<4x3x3xi32>
    %cst_15 = arith.constant dense<2147483647> : vector<4x3xi32>
    %42 = vector.multi_reduction <minsi>, %41, %cst_15 [2] : vector<4x3x3xi32> to vector<4x3xi32>
    %43 = vector.shape_cast %42 : vector<4x3xi32> to vector<4x3x1xi32>
    %44 = vector.broadcast %43 : vector<4x3x1xi32> to vector<4x3x3xi32>
    %45 = arith.cmpi eq, %0, %44 : vector<4x3x3xi32>
    %46 = arith.ori %33, %45 : vector<4x3x3xi1>
    %cst_16 = arith.constant -1.000000e+30 : f32
    %47 = vector.broadcast %cst_16 : f32 to vector<4x3x3xf32>
    %48 = arith.select %46, %21, %47 : vector<4x3x3xi1>, vector<4x3x3xf32>
    %cst_17 = arith.constant dense<0xFF800000> : vector<4x3xf32>
    %49 = vector.multi_reduction <maximumf>, %48, %cst_17 [2] : vector<4x3x3xf32> to vector<4x3xf32>
    %50 = vector.shape_cast %49 : vector<4x3xf32> to vector<4x3x1xf32>
    %51 = vector.broadcast %50 : vector<4x3x1xf32> to vector<4x3x3xf32>
    %52 = arith.subf %21, %51 : vector<4x3x3xf32>
    %53 = math.exp %52 : vector<4x3x3xf32>
    %cst_18 = arith.constant 0.000000e+00 : f32
    %54 = vector.broadcast %cst_18 : f32 to vector<4x3x3xf32>
    %55 = arith.select %46, %53, %54 : vector<4x3x3xi1>, vector<4x3x3xf32>
    %cst_19 = arith.constant dense<0.000000e+00> : vector<4x3xf32>
    %56 = vector.multi_reduction <add>, %55, %cst_19 [2] : vector<4x3x3xf32> to vector<4x3xf32>
    %57 = vector.shape_cast %56 : vector<4x3xf32> to vector<4x3x1xf32>
    %58 = tpu.reciprocal %57 {approx = true} : vector<4x3x1xf32> -> vector<4x3x1xf32>
    %59 = vector.broadcast %58 : vector<4x3x1xf32> to vector<4x3x3xf32>
    %60 = arith.mulf %55, %59 : vector<4x3x3xf32>
    %61 = arith.truncf %60 : vector<4x3x3xf32> to vector<4x3x3xbf16>
    %62 = arith.truncf %16 : vector<4x3x32xf32> to vector<4x3x32xbf16>
    "tpu.trace_start"() <{level = 10 : i32, message = "gqk,gkd->gqd"}> : () -> ()
    %cst_20 = arith.constant dense<0.000000e+00> : vector<4x3x32xf32>
    %63 = tpu.matmul %61, %62, %cst_20 {dimension_numbers = #tpu.dot_dimension_numbers<[2], [1], [1], [2], [0, 0, 0, 1, 1, 2], [0], [0]>} : vector<4x3x3xbf16>, vector<4x3x32xbf16>, vector<4x3x32xf32> -> vector<4x3x32xf32>
    %cst_21 = arith.constant 0.000000e+00 : f32
    "tpu.trace_stop"() : () -> ()
    %64 = vector.broadcast %cst_21 : f32 to vector<4x3x32xf32>
    %65 = arith.cmpf ogt, %63, %64 : vector<4x3x32xf32>
    %cst_22 = arith.constant 0.00999999977 : f32
    %66 = vector.broadcast %cst_22 : f32 to vector<4x3x32xf32>
    %67 = arith.mulf %66, %63 : vector<4x3x32xf32>
    %68 = arith.select %65, %63, %67 : vector<4x3x32xi1>, vector<4x3x32xf32>
    %69 = arith.addf %68, %1 : vector<4x3x32xf32>
    %c0_23 = arith.constant 0 : index
    %c0_24 = arith.constant 0 : index
    %c0_25 = arith.constant 0 : index
    %70 = vector.load %arg4[%c0_23, %c0_24, %c0_25] : memref<2x1x32xf32, #tpu.memory_space<vmem>>, vector<1x1x32xf32>
    %71 = vector.shape_cast %70 : vector<1x1x32xf32> to vector<1x32xf32>
    %c0_26 = arith.constant 0 : index
    %c0_27 = arith.constant 0 : index
    %c0_28 = arith.constant 0 : index
    %72 = vector.load %arg5[%c0_26, %c0_27, %c0_28] : memref<2x1x32xf32, #tpu.memory_space<vmem>>, vector<1x1x32xf32>
    %73 = vector.shape_cast %72 : vector<1x1x32xf32> to vector<1x32xf32>
    %cst_29 = arith.constant dense<0.000000e+00> : vector<4x3xf32>
    %74 = vector.multi_reduction <add>, %69, %cst_29 [2] : vector<4x3x32xf32> to vector<4x3xf32>
    %75 = vector.shape_cast %74 : vector<4x3xf32> to vector<4x3x1xf32>
    %cst_30 = arith.constant 3.200000e+01 : f32
    %76 = vector.broadcast %cst_30 : f32 to vector<4x3x1xf32>
    %77 = arith.divf %75, %76 : vector<4x3x1xf32>
    %78 = arith.mulf %69, %69 : vector<4x3x32xf32>
    %cst_31 = arith.constant dense<0.000000e+00> : vector<4x3xf32>
    %79 = vector.multi_reduction <add>, %78, %cst_31 [2] : vector<4x3x32xf32> to vector<4x3xf32>
    %80 = vector.shape_cast %79 : vector<4x3xf32> to vector<4x3x1xf32>
    %cst_32 = arith.constant 3.200000e+01 : f32
    %81 = vector.broadcast %cst_32 : f32 to vector<4x3x1xf32>
    %82 = arith.divf %80, %81 : vector<4x3x1xf32>
    %83 = arith.mulf %77, %77 : vector<4x3x1xf32>
    %84 = arith.subf %82, %83 : vector<4x3x1xf32>
    %cst_33 = arith.constant 0.000000e+00 : f32
    %85 = vector.broadcast %cst_33 : f32 to vector<4x3x1xf32>
    %86 = arith.maximumf %84, %85 : vector<4x3x1xf32>
    %87 = vector.broadcast %77 : vector<4x3x1xf32> to vector<4x3x32xf32>
    %88 = arith.subf %69, %87 : vector<4x3x32xf32>
    %cst_34 = arith.constant 9.99999974E-6 : f32
    %89 = vector.broadcast %cst_34 : f32 to vector<4x3x1xf32>
    %90 = arith.addf %86, %89 : vector<4x3x1xf32>
    %91 = math.rsqrt %90 : vector<4x3x1xf32>
    %92 = vector.broadcast %91 : vector<4x3x1xf32> to vector<4x3x32xf32>
    %93 = arith.mulf %88, %92 : vector<4x3x32xf32>
    %94 = vector.shape_cast %71 : vector<1x32xf32> to vector<1x1x32xf32>
    %95 = vector.broadcast %94 : vector<1x1x32xf32> to vector<4x3x32xf32>
    %96 = arith.mulf %93, %95 : vector<4x3x32xf32>
    %97 = vector.shape_cast %73 : vector<1x32xf32> to vector<1x1x32xf32>
    %98 = vector.broadcast %97 : vector<1x1x32xf32> to vector<4x3x32xf32>
    %99 = arith.addf %96, %98 : vector<4x3x32xf32>
    %100 = arith.truncf %99 : vector<4x3x32xf32> to vector<4x3x32xbf16>
    %c1 = arith.constant 1 : index
    %c0_35 = arith.constant 0 : index
    %c0_36 = arith.constant 0 : index
    %101 = vector.load %arg2[%c1, %c0_35, %c0_36] : memref<2x32x96xbf16, #tpu.memory_space<vmem>>, vector<1x32x96xbf16>
    %102 = vector.shape_cast %101 : vector<1x32x96xbf16> to vector<32x96xbf16>
    %103 = vector.shape_cast %102 : vector<32x96xbf16> to vector<1x32x96xbf16>
    %104 = vector.shape_cast %103 : vector<1x32x96xbf16> to vector<1x32x96xbf16>
    %105 = vector.broadcast %104 : vector<1x32x96xbf16> to vector<4x32x96xbf16>
    "tpu.trace_start"() <{level = 10 : i32, message = "gwh,ghd->gwd"}> : () -> ()
    %cst_37 = arith.constant dense<0.000000e+00> : vector<4x3x96xf32>
    %106 = tpu.matmul %100, %105, %cst_37 {dimension_numbers = #tpu.dot_dimension_numbers<[2], [1], [1], [2], [0, 0, 0, 1, 1, 2], [0], [0]>} : vector<4x3x32xbf16>, vector<4x32x96xbf16>, vector<4x3x96xf32> -> vector<4x3x96xf32>
    "tpu.trace_stop"() : () -> ()
    %c1_38 = arith.constant 1 : index
    %c0_39 = arith.constant 0 : index
    %c0_40 = arith.constant 0 : index
    %107 = vector.load %arg3[%c1_38, %c0_39, %c0_40] : memref<2x1x96xf32, #tpu.memory_space<vmem>>, vector<1x1x96xf32>
    %108 = vector.shape_cast %107 : vector<1x1x96xf32> to vector<1x96xf32>
    %109 = vector.shape_cast %108 : vector<1x96xf32> to vector<1x1x96xf32>
    %110 = vector.broadcast %109 : vector<1x1x96xf32> to vector<4x3x96xf32>
    %111 = arith.addf %106, %110 : vector<4x3x96xf32>
    %112 = vector.extract_strided_slice %111 {offsets = [0, 0, 0], sizes = [4, 3, 32], strides = [1, 1, 1]} : vector<4x3x96xf32> to vector<4x3x32xf32>
    %113 = vector.extract_strided_slice %111 {offsets = [0, 0, 32], sizes = [4, 3, 32], strides = [1, 1, 1]} : vector<4x3x96xf32> to vector<4x3x32xf32>
    %114 = vector.extract_strided_slice %111 {offsets = [0, 0, 64], sizes = [4, 3, 32], strides = [1, 1, 1]} : vector<4x3x96xf32> to vector<4x3x32xf32>
    %115 = arith.truncf %112 : vector<4x3x32xf32> to vector<4x3x32xbf16>
    %116 = arith.truncf %113 : vector<4x3x32xf32> to vector<4x3x32xbf16>
    "tpu.trace_start"() <{level = 10 : i32, message = "gqd,gkd->gqk"}> : () -> ()
    %cst_41 = arith.constant dense<0.000000e+00> : vector<4x3x3xf32>
    %117 = tpu.matmul %115, %116, %cst_41 {dimension_numbers = #tpu.dot_dimension_numbers<[2], [2], [1], [1], [0, 0, 0, 1, 1, 1], [0], [0]>} : vector<4x3x32xbf16>, vector<4x3x32xbf16>, vector<4x3x3xf32> -> vector<4x3x3xf32>
    "tpu.trace_stop"() : () -> ()
    %cst_42 = arith.constant 0.176776692 : f32
    %118 = vector.broadcast %cst_42 : f32 to vector<4x3x3xf32>
    %119 = arith.mulf %117, %118 : vector<4x3x3xf32>
    %false_43 = arith.constant false
    %120 = vector.broadcast %false_43 : i1 to vector<4x3x3xi1>
    %cst_44 = arith.constant dense<0xFF800000> : vector<4x3xf32>
    %121 = vector.multi_reduction <maximumf>, %119, %cst_44 [2] : vector<4x3x3xf32> to vector<4x3xf32>
    %122 = vector.shape_cast %121 : vector<4x3xf32> to vector<4x3x1xf32>
    %123 = vector.broadcast %122 : vector<4x3x1xf32> to vector<4x3x3xf32>
    %124 = arith.cmpf oeq, %119, %123 : vector<4x3x3xf32>
    %c3_i32_45 = arith.constant 3 : i32
    %125 = vector.broadcast %c3_i32_45 : i32 to vector<4x3x3xi32>
    %126 = arith.select %124, %0, %125 : vector<4x3x3xi1>, vector<4x3x3xi32>
    %cst_46 = arith.constant dense<2147483647> : vector<4x3xi32>
    %127 = vector.multi_reduction <minsi>, %126, %cst_46 [2] : vector<4x3x3xi32> to vector<4x3xi32>
    %128 = vector.shape_cast %127 : vector<4x3xi32> to vector<4x3x1xi32>
    %129 = vector.broadcast %128 : vector<4x3x1xi32> to vector<4x3x3xi32>
    %130 = arith.cmpi eq, %0, %129 : vector<4x3x3xi32>
    %131 = arith.ori %120, %130 : vector<4x3x3xi1>
    %cst_47 = arith.constant -1.000000e+30 : f32
    %132 = vector.broadcast %cst_47 : f32 to vector<4x3x3xf32>
    %133 = arith.select %130, %132, %119 : vector<4x3x3xi1>, vector<4x3x3xf32>
    %cst_48 = arith.constant dense<0xFF800000> : vector<4x3xf32>
    %134 = vector.multi_reduction <maximumf>, %133, %cst_48 [2] : vector<4x3x3xf32> to vector<4x3xf32>
    %135 = vector.shape_cast %134 : vector<4x3xf32> to vector<4x3x1xf32>
    %136 = vector.broadcast %135 : vector<4x3x1xf32> to vector<4x3x3xf32>
    %137 = arith.cmpf oeq, %133, %136 : vector<4x3x3xf32>
    %c3_i32_49 = arith.constant 3 : i32
    %138 = vector.broadcast %c3_i32_49 : i32 to vector<4x3x3xi32>
    %139 = arith.select %137, %0, %138 : vector<4x3x3xi1>, vector<4x3x3xi32>
    %cst_50 = arith.constant dense<2147483647> : vector<4x3xi32>
    %140 = vector.multi_reduction <minsi>, %139, %cst_50 [2] : vector<4x3x3xi32> to vector<4x3xi32>
    %141 = vector.shape_cast %140 : vector<4x3xi32> to vector<4x3x1xi32>
    %142 = vector.broadcast %141 : vector<4x3x1xi32> to vector<4x3x3xi32>
    %143 = arith.cmpi eq, %0, %142 : vector<4x3x3xi32>
    %144 = arith.ori %131, %143 : vector<4x3x3xi1>
    %cst_51 = arith.constant -1.000000e+30 : f32
    %145 = vector.broadcast %cst_51 : f32 to vector<4x3x3xf32>
    %146 = arith.select %144, %119, %145 : vector<4x3x3xi1>, vector<4x3x3xf32>
    %cst_52 = arith.constant dense<0xFF800000> : vector<4x3xf32>
    %147 = vector.multi_reduction <maximumf>, %146, %cst_52 [2] : vector<4x3x3xf32> to vector<4x3xf32>
    %148 = vector.shape_cast %147 : vector<4x3xf32> to vector<4x3x1xf32>
    %149 = vector.broadcast %148 : vector<4x3x1xf32> to vector<4x3x3xf32>
    %150 = arith.subf %119, %149 : vector<4x3x3xf32>
    %151 = math.exp %150 : vector<4x3x3xf32>
    %cst_53 = arith.constant 0.000000e+00 : f32
    %152 = vector.broadcast %cst_53 : f32 to vector<4x3x3xf32>
    %153 = arith.select %144, %151, %152 : vector<4x3x3xi1>, vector<4x3x3xf32>
    %cst_54 = arith.constant dense<0.000000e+00> : vector<4x3xf32>
    %154 = vector.multi_reduction <add>, %153, %cst_54 [2] : vector<4x3x3xf32> to vector<4x3xf32>
    %155 = vector.shape_cast %154 : vector<4x3xf32> to vector<4x3x1xf32>
    %156 = tpu.reciprocal %155 {approx = true} : vector<4x3x1xf32> -> vector<4x3x1xf32>
    %157 = vector.broadcast %156 : vector<4x3x1xf32> to vector<4x3x3xf32>
    %158 = arith.mulf %153, %157 : vector<4x3x3xf32>
    %159 = arith.truncf %158 : vector<4x3x3xf32> to vector<4x3x3xbf16>
    %160 = arith.truncf %114 : vector<4x3x32xf32> to vector<4x3x32xbf16>
    "tpu.trace_start"() <{level = 10 : i32, message = "gqk,gkd->gqd"}> : () -> ()
    %cst_55 = arith.constant dense<0.000000e+00> : vector<4x3x32xf32>
    %161 = tpu.matmul %159, %160, %cst_55 {dimension_numbers = #tpu.dot_dimension_numbers<[2], [1], [1], [2], [0, 0, 0, 1, 1, 2], [0], [0]>} : vector<4x3x3xbf16>, vector<4x3x32xbf16>, vector<4x3x32xf32> -> vector<4x3x32xf32>
    %cst_56 = arith.constant 0.000000e+00 : f32
    "tpu.trace_stop"() : () -> ()
    %162 = vector.broadcast %cst_56 : f32 to vector<4x3x32xf32>
    %163 = arith.cmpf ogt, %161, %162 : vector<4x3x32xf32>
    %cst_57 = arith.constant 0.00999999977 : f32
    %164 = vector.broadcast %cst_57 : f32 to vector<4x3x32xf32>
    %165 = arith.mulf %164, %161 : vector<4x3x32xf32>
    %166 = arith.select %163, %161, %165 : vector<4x3x32xi1>, vector<4x3x32xf32>
    %167 = arith.addf %166, %99 : vector<4x3x32xf32>
    %c1_58 = arith.constant 1 : index
    %c0_59 = arith.constant 0 : index
    %c0_60 = arith.constant 0 : index
    %168 = vector.load %arg4[%c1_58, %c0_59, %c0_60] : memref<2x1x32xf32, #tpu.memory_space<vmem>>, vector<1x1x32xf32>
    %169 = vector.shape_cast %168 : vector<1x1x32xf32> to vector<1x32xf32>
    %c1_61 = arith.constant 1 : index
    %c0_62 = arith.constant 0 : index
    %c0_63 = arith.constant 0 : index
    %170 = vector.load %arg5[%c1_61, %c0_62, %c0_63] : memref<2x1x32xf32, #tpu.memory_space<vmem>>, vector<1x1x32xf32>
    %171 = vector.shape_cast %170 : vector<1x1x32xf32> to vector<1x32xf32>
    %cst_64 = arith.constant dense<0.000000e+00> : vector<4x3xf32>
    %172 = vector.multi_reduction <add>, %167, %cst_64 [2] : vector<4x3x32xf32> to vector<4x3xf32>
    %173 = vector.shape_cast %172 : vector<4x3xf32> to vector<4x3x1xf32>
    %cst_65 = arith.constant 3.200000e+01 : f32
    %174 = vector.broadcast %cst_65 : f32 to vector<4x3x1xf32>
    %175 = arith.divf %173, %174 : vector<4x3x1xf32>
    %176 = arith.mulf %167, %167 : vector<4x3x32xf32>
    %cst_66 = arith.constant dense<0.000000e+00> : vector<4x3xf32>
    %177 = vector.multi_reduction <add>, %176, %cst_66 [2] : vector<4x3x32xf32> to vector<4x3xf32>
    %178 = vector.shape_cast %177 : vector<4x3xf32> to vector<4x3x1xf32>
    %cst_67 = arith.constant 3.200000e+01 : f32
    %179 = vector.broadcast %cst_67 : f32 to vector<4x3x1xf32>
    %180 = arith.divf %178, %179 : vector<4x3x1xf32>
    %181 = arith.mulf %175, %175 : vector<4x3x1xf32>
    %182 = arith.subf %180, %181 : vector<4x3x1xf32>
    %cst_68 = arith.constant 0.000000e+00 : f32
    %183 = vector.broadcast %cst_68 : f32 to vector<4x3x1xf32>
    %184 = arith.maximumf %182, %183 : vector<4x3x1xf32>
    %185 = vector.broadcast %175 : vector<4x3x1xf32> to vector<4x3x32xf32>
    %186 = arith.subf %167, %185 : vector<4x3x32xf32>
    %cst_69 = arith.constant 9.99999974E-6 : f32
    %187 = vector.broadcast %cst_69 : f32 to vector<4x3x1xf32>
    %188 = arith.addf %184, %187 : vector<4x3x1xf32>
    %189 = math.rsqrt %188 : vector<4x3x1xf32>
    %190 = vector.broadcast %189 : vector<4x3x1xf32> to vector<4x3x32xf32>
    %191 = arith.mulf %186, %190 : vector<4x3x32xf32>
    %192 = vector.shape_cast %169 : vector<1x32xf32> to vector<1x1x32xf32>
    %193 = vector.broadcast %192 : vector<1x1x32xf32> to vector<4x3x32xf32>
    %194 = arith.mulf %191, %193 : vector<4x3x32xf32>
    %195 = vector.shape_cast %171 : vector<1x32xf32> to vector<1x1x32xf32>
    %196 = vector.broadcast %195 : vector<1x1x32xf32> to vector<4x3x32xf32>
    %197 = arith.addf %194, %196 : vector<4x3x32xf32>
    %c0_70 = arith.constant 0 : index
    %c0_71 = arith.constant 0 : index
    %c0_72 = arith.constant 0 : index
    %198 = vector.load %arg6[%c0_70, %c0_71, %c0_72] : memref<4x3x32xf32, #tpu.memory_space<vmem>>, vector<4x3x32xf32>
    tpu.vector_store %arg6[%c0_70, %c0_71, %c0_72], %197 {strides = array<i32>} : memref<4x3x32xf32, #tpu.memory_space<vmem>>, vector<4x3x32xf32>,
    return
  }
  func.func @transform_0(%arg0: i32) -> (i32, i32, i32) {
    %c0_i32 = arith.constant 0 : i32
    %c0_i32_0 = arith.constant 0 : i32
    %c0_i32_1 = arith.constant 0 : i32
    return %arg0, %c0_i32, %c0_i32_0 : i32, i32, i32
  }
  func.func @transform_1(%arg0: i32) -> (i32, i32, i32) {
    %c0_i32 = arith.constant 0 : i32
    %c0_i32_0 = arith.constant 0 : i32
    %c0_i32_1 = arith.constant 0 : i32
    %c0_i32_2 = arith.constant 0 : i32
    return %c0_i32, %c0_i32_0, %c0_i32_1 : i32, i32, i32
  }
  func.func @transform_2(%arg0: i32) -> (i32, i32, i32) {
    %c0_i32 = arith.constant 0 : i32
    %c0_i32_0 = arith.constant 0 : i32
    %c0_i32_1 = arith.constant 0 : i32
    %c0_i32_2 = arith.constant 0 : i32
    return %c0_i32, %c0_i32_0, %c0_i32_1 : i32, i32, i32
  }
  func.func @transform_3(%arg0: i32) -> (i32, i32, i32) {
    %c0_i32 = arith.constant 0 : i32
    %c0_i32_0 = arith.constant 0 : i32
    %c0_i32_1 = arith.constant 0 : i32
    %c0_i32_2 = arith.constant 0 : i32
    return %c0_i32, %c0_i32_0, %c0_i32_1 : i32, i32, i32
  }
  func.func @transform_4(%arg0: i32) -> (i32, i32, i32) {
    %c0_i32 = arith.constant 0 : i32
    %c0_i32_0 = arith.constant 0 : i32
    %c0_i32_1 = arith.constant 0 : i32
    %c0_i32_2 = arith.constant 0 : i32
    return %c0_i32, %c0_i32_0, %c0_i32_1 : i32, i32, i32
  }
  func.func @transform_5(%arg0: i32) -> (i32, i32, i32) {
    %c0_i32 = arith.constant 0 : i32
    %c0_i32_0 = arith.constant 0 : i32
    %c0_i32_1 = arith.constant 0 : i32
    return %arg0, %c0_i32, %c0_i32_0 : i32, i32, i32
  }
}

</mosaic_0001>

<bundles_post_ra>
// kernel: tpu_custom_call.1
= control target key start
LH: loop header
LB: loop body
LE: loop exit
PB: predicated region body
PF: predicated region fallthrough
CT: control target
= control target key end

     0   :  { %s1766_s18 = smov 0   ;;  %s2332_s0 = inlined_call_operand.vmem [shape: f32[8,3,32], index: 0, kind: input, shape index: {}]   ;;  %s2333_s1 = inlined_call_operand.vmem [shape: bf16[2,32,96], index: 1, kind: input, shape index: {}]   ;;  %s2334_s2 = inlined_call_operand.vmem [shape: f32[2,1,96], index: 2, kind: input, shape index: {}]   ;;  %s2335_s3 = inlined_call_operand.vmem [shape: f32[2,1,32], index: 3, kind: input, shape index: {}]   ;;  %s2336_s4 = inlined_call_operand.vmem [shape: f32[2,1,32], index: 4, kind: input, shape index: {}]   ;;  %s2337_s5 = inlined_call_operand.vmem [shape: f32[8,3,32], index: 5, kind: output, shape index: {}]  }
   0x1 LB: > { %s1594_s19 = sadd.s32 4294967295, %s1730_s18   ;;  %p1598_p0 = scmp.ge.s32.totalorder %s1730_s18, 1  ;;  %s1730_s18 = sphi %s1766_s18, %s15_s18  }
   0x2   : > { %p188_p1 = scmp.lt.s32.totalorder %s1730_s18, 3 }
   0x4   : > { %p189_p2 = pnand %p1598_p0, %p188_p1 }
   0x5   : > { %s1599_s22 = sshll.u32 (!%p189_p2), %s1594_s19, 2  ;;  %s1732_s6 = smov (!%p189_p2), 96  }
   0x6   : > { %192 = sbr.rel (%p189_p2) target bundleno = 3422 (0xd5e), region = 40  ;;  %p217_p3 = scmp.lt.s32.totalorder (!%p189_p2), %s1599_s22, 7 }
   0x7   : > { %s1733_s7 = smov (!%p189_p2), 64  }
   0xb   : > { %v1653_v0 = vld [vmem:[%s2333_s1 + $0x8] sm:$0xff]  ;;  %v1652_v1 = vld [vmem:[%s2333_s1] sm:$0xff]  ;;  %s2355_s22 = smov (!%p217_p3, %s1599_s22), 7  ;;  %vm259_vm0 = vcmask 261120   ;;  %vm428_vm1 = vcmask 18432   ;;  %v229_v59 = vlaneseq }
   0xc   : > { %269 = vmatpush.bf16.msra.mxu0 %v1653_v0  ;;  %301 = vmatpush.bf16.msra.mxu2 %v1653_v0  ;;  %s1600_s25 = sshll.u32 %s2355_s22, 2  ;;  %v1668_v10 = vld [vmem:[%s2334_s2] ss:$0 sm:$0xff] }
   0xd   : > { %317 = vmatpush.bf16.msra.mxu3 %v1653_v0  ;;  %285 = vmatpush.bf16.msra.mxu1 %v1653_v0  ;;  %s220_s28 = scalar_lea.vmem %s2332_s0, %s1600_s25  ;;  %v1851_v60 = vand.u32 127, %v229_v59  ;;  %s226_s27 = scalar_lea.vmem %s2337_s5, %s1600_s25 }
   0xe   : > { %v1788_v2 = vld [vmem:[%s220_s28] sm:$0x7]  ;;  %v1790_v3 = vld [vmem:[%s220_s28 + $0x8] sm:$0x7]  ;;  %v1792_v4 = vld [vmem:[%s220_s28 + $0xc] sm:$0x7] }
   0xf   : > { %v235_v5 = vpack.c.bf16 %v1788_v2, %v1788_v2  ;;  %v237_v6 = vpack.c.bf16 %v1790_v3, %v1790_v3  ;;  %v238_v7 = vpack.c.bf16 %v1792_v4, %v1792_v4  ;;  %v1800_v8 = vld [vmem:[%s220_s28 + $0x4] sm:$0x7] }
  0x10   : > { %270 = vmatpush.bf16.msra.mxu0 %v1652_v1  ;;  %302 = vmatpush.bf16.msra.mxu2 %v1652_v1  ;;  %v236_v9 = vpack.c.bf16 %v1800_v8, %v1800_v8 }
  0x11   : > { %318 = vmatpush.bf16.msra.mxu3 %v1652_v1  ;;  %286 = vmatpush.bf16.msra.mxu1 %v1652_v1 }
  0x13   : > { %1611 = vmatmul.msk.bf16.vlgmr.msra.gmra.mxu0 %vm259_vm0, %v235_v5  ;;  %1613 = vmatmul.msk.bf16.vlgmr.msra.gmra.mxu2 %vm259_vm0, %v237_v6 }
  0x14   : > { %1614 = vmatmul.msk.bf16.vlgmr.msra.gmra.mxu3 %vm259_vm0, %v238_v7  ;;  %1612 = vmatmul.msk.bf16.vlgmr.msra.gmra.mxu1 %vm259_vm0, %v236_v9 }
  0x90   : > { %v272_v11 = vpop.f32.mrf.mxu0 }
  0x91   : > { %v273_v12 = vadd.f32 %v1668_v10, %v272_v11  ;;  %v288_v13 = vpop.f32.mrf.mxu1 }
  0x92   : > { %v289_v14 = vadd.f32 %v1668_v10, %v288_v13 }
  0x93   : > { %v324_v15 = vpack.c.bf16 %v273_v12, %v273_v12 }
  0x94   : > { %v325_v16 = vpack.c.bf16 %v289_v14, %v289_v14 }
  0x95   : > { %v329_v17 = vunpack.c.l.b16 %v324_v15 }
  0x96   : > { %v304_v18 = vpop.f32.mrf.mxu2  ;;  %v353_v25 = vunpack.c.l.b16 %v325_v16 }
  0x97   : > { %v305_v19 = vadd.f32 %v1668_v10, %v304_v18  ;;  %v320_v20 = vpop.f32.mrf.mxu3  ;;  %v1811_v21 = vpack.c.b16 %v329_v17, %v329_v17 }
  0x98   : > { %v321_v22 = vadd.f32 %v1668_v10, %v320_v20  ;;  %v274_v23 = vpop.f32.mrf.mxu0  ;;  %v1815_v29 = vpack.c.b16 %v353_v25, %v353_v25 }
  0x99   : > { %v326_v24 = vpack.c.bf16 %v305_v19, %v305_v19  ;;  %331 = vrot.lane.b32.xlu1 %v1811_v21, %s1732_s6  ;;  %v290_v26 = vpop.f32.mrf.mxu1 }
  0x9a   : > { %v327_v27 = vpack.c.bf16 %v321_v22, %v321_v22 }
  0x9b   : > { %v377_v28 = vunpack.c.l.b16 %v326_v24 }
  0x9c   : > { %v401_v32 = vunpack.c.l.b16 %v327_v27 }
  0x9d   : > { %v1817_v30 = vpack.c.b16 %v377_v28, %v377_v28 }
  0x9e   : > { %v306_v31 = vpop.f32.mrf.mxu2  ;;  %v1823_v34 = vpack.c.b16 %v401_v32, %v401_v32 }
  0x9f   : > { %v322_v33 = vpop.f32.mrf.mxu3  ;;  %379 = vrot.lane.b32.xlu0 %v1817_v30, %s1732_s6 }
  0xa1   : > { %355 = vrot.lane.b32.xlu1 %v1815_v29, %s1732_s6 }
  0xa7   : > { %403 = vrot.lane.b32.xlu0 %v1823_v34, %s1732_s6 }
 0x10b   : > { %v332_v35 = vpop.permute.xlu1 %331 }
 0x10c   : > { %v337_v36 = vsel %vm259_vm0, %v332_v35, 0 }
 0x10d   : > { %346 = vmatpush.bf16.xpose.msrb.mxu0 %v337_v36 }
 0x111   : > { %v380_v37 = vpop.permute.xlu0 %379 }
 0x112   : > { %v385_v38 = vsel %vm259_vm0, %v380_v37, 0 }
 0x113   : > { %394 = vmatpush.bf16.xpose.msrb.mxu2 %v385_v38  ;;  %v356_v39 = vpop.permute.xlu1 %355 }
 0x114   : > { %1615 = vmatmul.msk.bf16.vlgmr.msrb.gmra.mxu0 %vm259_vm0, %v324_v15  ;;  %v361_v40 = vsel %vm259_vm0, %v356_v39, 0 }
 0x115   : > { %370 = vmatpush.bf16.xpose.msrb.mxu1 %v361_v40 }
 0x119   : > { %v404_v41 = vpop.permute.xlu0 %403 }
 0x11a   : > { %1617 = vmatmul.msk.bf16.vlgmr.msrb.gmra.mxu2 %vm259_vm0, %v326_v24  ;;  %v409_v42 = vsel %vm259_vm0, %v404_v41, 0 }
 0x11b   : > { %418 = vmatpush.bf16.xpose.msrb.mxu3 %v409_v42 }
 0x11c   : > { %1616 = vmatmul.msk.bf16.vlgmr.msrb.gmra.mxu1 %vm259_vm0, %v325_v16 }
 0x122   : > { %1618 = vmatmul.msk.bf16.vlgmr.msrb.gmra.mxu3 %vm259_vm0, %v327_v27 }
 0x191   : > { %v348_v43 = vpop.f32.mrf.mxu0 }
 0x192   : > { %v1835_v44 = vmul.f32 0.17677669, %v348_v43 }
 0x194   : > { %v429_v45 = vsel %vm428_vm1, %v1835_v44, -inf }
 0x195   : > { %430 = vmax.xlane.f32.xlu0 %v429_v45 }
 0x199   : > { %v350_v46 = vpop.f32.mrf.mxu0  ;;  %v372_v47 = vpop.f32.mrf.mxu1 }
 0x19a   : > { %v1839_v48 = vmul.f32 0.17677669, %v372_v47 }
 0x19c   : > { %v432_v49 = vsel %vm428_vm1, %v1839_v48, -inf }
 0x19d   : > { %v396_v50 = vpop.f32.mrf.mxu2  ;;  %433 = vmax.xlane.f32.xlu1 %v432_v49 }
 0x19e   : > { %v1843_v51 = vmul.f32 0.17677669, %v396_v50 }
 0x1a0   : > { %v435_v52 = vsel %vm428_vm1, %v1843_v51, -inf }
 0x1a1   : > { %436 = vmax.xlane.f32.xlu2 %v435_v52  ;;  %v374_v53 = vpop.f32.mrf.mxu1 }
 0x1a5   : > { %v398_v54 = vpop.f32.mrf.mxu2  ;;  %v420_v55 = vpop.f32.mrf.mxu3 }
 0x1a6   : > { %v1847_v56 = vmul.f32 0.17677669, %v420_v55 }
 0x1a8   : > { %v438_v57 = vsel %vm428_vm1, %v1847_v56, -inf }
 0x1a9   : > { %439 = vmax.xlane.f32.xlu2 %v438_v57 }
 0x1ad   : > { %v422_v58 = vpop.f32.mrf.mxu3 }
 0x208   : > { %v431_v1 = vpop.xlane.xlu0 %430 }
 0x209   : > { %vm441_vm3 = vcmp.eq.f32.partialorder %v1835_v44, %v431_v1 }
 0x20a   : > { %v445_v10 = vsel %vm441_vm3, %v1851_v60, 3 }
 0x20b   : > { %v449_v14 = vsel %vm428_vm1, %v445_v10, 2147483647 }
 0x20c   : > { %v451_v15 = vshra.s32 %v449_v14, 16  ;;  %v450_v32 = vand.u32 65535, %v449_v14 }
 0x20e   : > { %v453_v17 = vcvt.s32.f32 %v451_v15  ;;  %v452_v35 = vcvt.s32.f32 %v450_v32 }
 0x210   : > { %v434_v12 = vpop.xlane.xlu1 %433 }
 0x211   : > { %vm442_vm5 = vcmp.eq.f32.partialorder %v1839_v48, %v434_v12 }
 0x212   : > { %v446_v16 = vsel %vm442_vm5, %v1851_v60, 3 }
 0x213   : > { %v464_v18 = vsel %vm428_vm1, %v446_v16, 2147483647 }
 0x214   : > { %v437_v61 = vpop.xlane.xlu2 %436  ;;  %v466_v19 = vshra.s32 %v464_v18, 16  ;;  %v465_v37 = vand.u32 65535, %v464_v18 }
 0x215   : > { %vm443_vm2 = vcmp.eq.f32.partialorder %v1843_v51, %v437_v61 }
 0x216   : > { %v447_v62 = vsel %vm443_vm2, %v1851_v60, 3  ;;  %v468_v20 = vcvt.s32.f32 %v466_v19  ;;  %v467_v39 = vcvt.s32.f32 %v465_v37 }
 0x217   : > { %v479_v63 = vsel %vm428_vm1, %v447_v62, 2147483647 }
 0x218   : > { %v481_v0 = vshra.s32 %v479_v63, 16  ;;  %v480_v22 = vand.u32 65535, %v479_v63 }
 0x21a   : > { %v483_v5 = vcvt.s32.f32 %v481_v0  ;;  %v482_v24 = vcvt.s32.f32 %v480_v22 }
 0x21c   : > { %484 = vmin.xlane.f32.xlu2 %v483_v5  ;;  %v440_v6 = vpop.xlane.xlu2 %439 }
 0x21d   : > { %vm444_vm4 = vcmp.eq.f32.partialorder %v1847_v56, %v440_v6 }
 0x21e   : > { %v448_v7 = vsel %vm444_vm4, %v1851_v60, 3 }
 0x21f   : > { %v494_v9 = vsel %vm428_vm1, %v448_v7, 2147483647 }
 0x220   : > { %v496_v11 = vshra.s32 %v494_v9, 16  ;;  %v495_v26 = vand.u32 65535, %v494_v9 }
 0x222   : > { %v498_v13 = vcvt.s32.f32 %v496_v11  ;;  %v497_v28 = vcvt.s32.f32 %v495_v26 }
 0x224   : > { %499 = vmin.xlane.f32.xlu2 %v498_v13 }
 0x22c   : > { %454 = vmin.xlane.f32.xlu2 %v453_v17 }
 0x234   : > { %469 = vmin.xlane.f32.xlu2 %v468_v20 }
 0x28f   : > { %v485_v23 = vpop.xlane.xlu2 %484 }
 0x290   : > { %vm486_vm6 = vcmp.eq.f32.partialorder %v483_v5, %v485_v23  ;;  %v491_v41 = vcvt.f32.s32 %v485_v23 }
 0x291   : > { %v487_v25 = vsel %vm486_vm6, %v482_v24, inf }
 0x292   : > { %488 = vmin.xlane.f32.xlu2 %v487_v25  ;;  %v492_v43 = vshll.u32 %v491_v41, 16 }
 0x297   : > { %v500_v27 = vpop.xlane.xlu2 %499 }
 0x298   : > { %vm501_vm7 = vcmp.eq.f32.partialorder %v498_v13, %v500_v27  ;;  %v506_v47 = vcvt.f32.s32 %v500_v27 }
 0x299   : > { %v502_v31 = vsel %vm501_vm7, %v497_v28, inf }
 0x29a   : > { %503 = vmin.xlane.f32.xlu2 %v502_v31  ;;  %v507_v53 = vshll.u32 %v506_v47, 16 }
 0x29f   : > { %v455_v33 = vpop.xlane.xlu2 %454 }
 0x2a0   : > { %vm456_vm8 = vcmp.eq.f32.partialorder %v453_v17, %v455_v33  ;;  %v461_v57 = vcvt.f32.s32 %v455_v33 }
 0x2a1   : > { %v457_v36 = vsel %vm456_vm8, %v452_v35, inf }
 0x2a2   : > { %458 = vmin.xlane.f32.xlu0 %v457_v36  ;;  %v462_v62 = vshll.u32 %v461_v57, 16 }
 0x2a7   : > { %v470_v38 = vpop.xlane.xlu2 %469 }
 0x2a8   : > { %vm471_vm9 = vcmp.eq.f32.partialorder %v468_v20, %v470_v38  ;;  %v476_v1 = vcvt.f32.s32 %v470_v38 }
 0x2a9   : > { %v472_v40 = vsel %vm471_vm9, %v467_v39, inf }
 0x2aa   : > { %473 = vmin.xlane.f32.xlu1 %v472_v40  ;;  %v477_v9 = vshll.u32 %v476_v1, 16 }
 0x305   : > { %v489_v42 = vpop.xlane.xlu2 %488 }
 0x306   : > { %v490_v45 = vcvt.f32.s32 %v489_v42 }
 0x308   : > { %v1865_v46 = vadd.s32 %v492_v43, %v490_v45 }
 0x30a   : > { %vm511_vm10 = vcmp.eq.s32.totalorder %v1851_v60, %v1865_v46 }
 0x30b   : > { %v515_v49 = vsel %vm511_vm10, -1e+30, %v1843_v51 }
 0x30c   : > { %v523_v50 = vsel %vm428_vm1, %v515_v49, -inf }
 0x30d   : > { %524 = vmax.xlane.f32.xlu2 %v523_v50  ;;  %v504_v52 = vpop.xlane.xlu2 %503 }
 0x30e   : > { %v505_v54 = vcvt.f32.s32 %v504_v52 }
 0x310   : > { %v1874_v55 = vadd.s32 %v507_v53, %v505_v54 }
 0x312   : > { %vm512_vm11 = vcmp.eq.s32.totalorder %v1851_v60, %v1874_v55 }
 0x313   : > { %v516_v58 = vsel %vm512_vm11, -1e+30, %v1847_v56 }
 0x314   : > { %v526_v59 = vsel %vm428_vm1, %v516_v58, -inf }
 0x315   : > { %v459_v61 = vpop.xlane.xlu0 %458  ;;  %527 = vmax.xlane.f32.xlu0 %v526_v59 }
 0x316   : > { %v460_v63 = vcvt.f32.s32 %v459_v61 }
 0x318   : > { %v1883_v0 = vadd.s32 %v462_v62, %v460_v63 }
 0x31a   : > { %vm509_vm12 = vcmp.eq.s32.totalorder %v1851_v60, %v1883_v0 }
 0x31b   : > { %v513_v5 = vsel %vm509_vm12, -1e+30, %v1835_v44 }
 0x31c   : > { %v517_v6 = vsel %vm428_vm1, %v513_v5, -inf }
 0x31d   : > { %518 = vmax.xlane.f32.xlu1 %v517_v6  ;;  %v474_v7 = vpop.xlane.xlu1 %473 }
 0x31e   : > { %v475_v10 = vcvt.f32.s32 %v474_v7 }
 0x320   : > { %v1892_v11 = vadd.s32 %v477_v9, %v475_v10 }
 0x322   : > { %vm510_vm13 = vcmp.eq.s32.totalorder %v1851_v60, %v1892_v11 }
 0x323   : > { %v514_v12 = vsel %vm510_vm13, -1e+30, %v1839_v48 }
 0x324   : > { %v520_v13 = vsel %vm428_vm1, %v514_v12, -inf }
 0x325   : > { %521 = vmax.xlane.f32.xlu2 %v520_v13 }
 0x380   : > { %v525_v14 = vpop.xlane.xlu2 %524 }
 0x381   : > { %vm531_vm14 = vcmp.eq.f32.partialorder %v515_v49, %v525_v14 }
 0x382   : > { %v535_v15 = vsel %vm531_vm14, %v1851_v60, 3 }
 0x383   : > { %v567_v16 = vsel %vm428_vm1, %v535_v15, 2147483647 }
 0x384   : > { %v569_v17 = vshra.s32 %v567_v16, 16  ;;  %v568_v38 = vand.u32 65535, %v567_v16 }
 0x386   : > { %v571_v18 = vcvt.s32.f32 %v569_v17  ;;  %v570_v40 = vcvt.s32.f32 %v568_v38 }
 0x388   : > { %v528_v19 = vpop.xlane.xlu0 %527  ;;  %572 = vmin.xlane.f32.xlu0 %v571_v18 }
 0x389   : > { %vm532_vm15 = vcmp.eq.f32.partialorder %v516_v58, %v528_v19 }
 0x38a   : > { %v536_v20 = vsel %vm532_vm15, %v1851_v60, 3 }
 0x38b   : > { %v582_v22 = vsel %vm428_vm1, %v536_v20, 2147483647 }
 0x38c   : > { %v584_v23 = vshra.s32 %v582_v22, 16  ;;  %v583_v42 = vand.u32 65535, %v582_v22 }
 0x38e   : > { %v586_v24 = vcvt.s32.f32 %v584_v23  ;;  %v585_v45 = vcvt.s32.f32 %v583_v42 }
 0x390   : > { %587 = vmin.xlane.f32.xlu1 %v586_v24  ;;  %v519_v25 = vpop.xlane.xlu1 %518 }
 0x391   : > { %vm529_vm2 = vcmp.eq.f32.partialorder %v513_v5, %v519_v25 }
 0x392   : > { %v533_v26 = vsel %vm529_vm2, %v1851_v60, 3 }
 0x393   : > { %v537_v27 = vsel %vm428_vm1, %v533_v26, 2147483647 }
 0x394   : > { %v539_v28 = vshra.s32 %v537_v27, 16  ;;  %v538_v49 = vand.u32 65535, %v537_v27 }
 0x396   : > { %v541_v31 = vcvt.s32.f32 %v539_v28  ;;  %v540_v52 = vcvt.s32.f32 %v538_v49 }
 0x398   : > { %v522_v32 = vpop.xlane.xlu2 %521  ;;  %542 = vmin.xlane.f32.xlu2 %v541_v31 }
 0x399   : > { %vm530_vm3 = vcmp.eq.f32.partialorder %v514_v12, %v522_v32 }
 0x39a   : > { %v534_v33 = vsel %vm530_vm3, %v1851_v60, 3  ;;  %vm668_vm3 = vcmask 1041408  }
 0x39b   : > { %v552_v35 = vsel %vm428_vm1, %v534_v33, 2147483647 }
 0x39c   : > { %v554_v36 = vshra.s32 %v552_v35, 16  ;;  %v553_v54 = vand.u32 65535, %v552_v35 }
 0x39e   : > { %v556_v37 = vcvt.s32.f32 %v554_v36  ;;  %v555_v58 = vcvt.s32.f32 %v553_v54 }
 0x3a0   : > { %557 = vmin.xlane.f32.xlu0 %v556_v37 }
 0x3fb   : > { %v573_v39 = vpop.xlane.xlu0 %572 }
 0x3fc   : > { %vm574_vm4 = vcmp.eq.f32.partialorder %v571_v18, %v573_v39  ;;  %v579_v61 = vcvt.f32.s32 %v573_v39 }
 0x3fd   : > { %v575_v41 = vsel %vm574_vm4, %v570_v40, inf  ;;  %vm663_vm4 = vcmask 23552  }
 0x3fe   : > { %576 = vmin.xlane.f32.xlu1 %v575_v41  ;;  %v580_v63 = vshll.u32 %v579_v61, 16 }
 0x403   : > { %v588_v43 = vpop.xlane.xlu1 %587 }
 0x404   : > { %vm589_vm5 = vcmp.eq.f32.partialorder %v586_v24, %v588_v43  ;;  %v594_v6 = vcvt.f32.s32 %v588_v43 }
 0x405   : > { %v590_v47 = vsel %vm589_vm5, %v585_v45, inf }
 0x406   : > { %591 = vmin.xlane.f32.xlu2 %v590_v47  ;;  %v595_v13 = vshll.u32 %v594_v6, 16 }
 0x40b   : > { %v543_v50 = vpop.xlane.xlu2 %542 }
 0x40c   : > { %vm544_vm6 = vcmp.eq.f32.partialorder %v541_v31, %v543_v50  ;;  %v549_v16 = vcvt.f32.s32 %v543_v50 }
 0x40d   : > { %v545_v53 = vsel %vm544_vm6, %v540_v52, inf  ;;  %vm768_vm6 = vcmask 256000  }
 0x40e   : > { %546 = vmin.xlane.f32.xlu0 %v545_v53  ;;  %v550_v20 = vshll.u32 %v549_v16, 16 }
 0x413   : > { %v558_v57 = vpop.xlane.xlu0 %557 }
 0x414   : > { %vm559_vm7 = vcmp.eq.f32.partialorder %v556_v37, %v558_v57  ;;  %v564_v24 = vcvt.f32.s32 %v558_v57 }
 0x415   : > { %v560_v59 = vsel %vm559_vm7, %v555_v58, inf }
 0x416   : > { %561 = vmin.xlane.f32.xlu1 %v560_v59  ;;  %v565_v28 = vshll.u32 %v564_v24, 16 }
 0x471   : > { %v577_v62 = vpop.xlane.xlu1 %576 }
 0x472   : > { %v578_v1 = vcvt.f32.s32 %v577_v62 }
 0x474   : > { %v581_v5 = vadd.s32 %v580_v63, %v578_v1 }
 0x476   : > { %vm599_vm8 = vcmp.eq.s32.totalorder %v1851_v60, %v581_v5 }
 0x477   : > { %vm1913_vm9 = vmor %vm511_vm10, %vm599_vm8 }
 0x478   : > { %v607_v9 = vsel %vm1913_vm9, %v1843_v51, -1e+30 }
 0x479   : > { %v592_v10 = vpop.xlane.xlu2 %591  ;;  %v615_v12 = vsel %vm428_vm1, %v607_v9, -inf }
 0x47a   : > { %v593_v14 = vcvt.f32.s32 %v592_v10  ;;  %616 = vmax.xlane.f32.xlu2 %v615_v12 }
 0x47c   : > { %v596_v15 = vadd.s32 %v595_v13, %v593_v14 }
 0x47e   : > { %vm600_vm14 = vcmp.eq.s32.totalorder %v1851_v60, %v596_v15 }
 0x47f   : > { %vm1925_vm10 = vmor %vm512_vm11, %vm600_vm14 }
 0x480   : > { %v608_v17 = vsel %vm1925_vm10, %v1847_v56, -1e+30 }
 0x481   : > { %v547_v18 = vpop.xlane.xlu0 %546  ;;  %v618_v19 = vsel %vm428_vm1, %v608_v17, -inf }
 0x482   : > { %v548_v22 = vcvt.f32.s32 %v547_v18  ;;  %619 = vmax.xlane.f32.xlu0 %v618_v19 }
 0x484   : > { %v551_v23 = vadd.s32 %v550_v20, %v548_v22 }
 0x486   : > { %vm597_vm15 = vcmp.eq.s32.totalorder %v1851_v60, %v551_v23 }
 0x487   : > { %vm1937_vm11 = vmor %vm509_vm12, %vm597_vm15 }
 0x488   : > { %v605_v25 = vsel %vm1937_vm11, %v1835_v44, -1e+30 }
 0x489   : > { %v562_v26 = vpop.xlane.xlu1 %561  ;;  %v609_v27 = vsel %vm428_vm1, %v605_v25, -inf }
 0x48a   : > { %v563_v31 = vcvt.f32.s32 %v562_v26  ;;  %610 = vmax.xlane.f32.xlu1 %v609_v27 }
 0x48c   : > { %v566_v32 = vadd.s32 %v565_v28, %v563_v31 }
 0x48e   : > { %vm598_vm2 = vcmp.eq.s32.totalorder %v1851_v60, %v566_v32 }
 0x48f   : > { %vm1949_vm12 = vmor %vm510_vm13, %vm598_vm2  ;;  %vm667_vm13 = vcmask 1040384  }
 0x490   : > { %v606_v33 = vsel %vm1949_vm12, %v1839_v48, -1e+30 }
 0x491   : > { %v612_v35 = vsel %vm428_vm1, %v606_v33, -inf }
 0x492   : > { %613 = vmax.xlane.f32.xlu2 %v612_v35 }
 0x496   : > { %729 = vrot.lane.b32.xlu0 %v1823_v34, %s1733_s7 }
 0x4aa   : > { %708 = vrot.lane.b32.xlu2 %v1817_v30, %s1733_s7  ;;  %v1734_v30 = vmov 65535  }
 0x4ab   : > { %v669_v45 = vsel %vm667_vm13, 4294967295, %v1734_v30 }
 0x4ac   : > { %v1968_v50 = vsel %vm668_vm3, %v669_v45, 0 }
 0x4ed   : > { %v617_v36 = vpop.xlane.xlu2 %616 }
 0x4ee   : > { %v623_v11 = vsub.f32 %v1843_v51, %v617_v36 }
 0x4f0   : > { %v629_v37 = vmul.f32 1.442695, %v623_v11 }
 0x4f2   : > { %1674 = vpow2.f32 %v629_v37 }
 0x4f5   : > { %v620_v43 = vpop.xlane.xlu0 %619 }
 0x4f6   : > { %v624_v47 = vsub.f32 %v1847_v56, %v620_v43 }
 0x4f8   : > { %v1675_v38 = vpop.eup %1674  ;;  %v631_v58 = vmul.f32 1.442695, %v624_v47 }
 0x4f9   : > { %v635_v39 = vsel %vm1913_vm9, %v1675_v38, 0.0 }
 0x4fa   : > { %v643_v40 = vsel %vm428_vm1, %v635_v39, 0.0 }
 0x4fb   : > { %644 = vadd.xlane.f32.xlu0 %v643_v40 }
 0x4fd   : > { %v611_v41 = vpop.xlane.xlu1 %610 }
 0x4fe   : > { %v621_v42 = vsub.f32 %v1835_v44, %v611_v41 }
 0x500   : > { %v625_v34 = vmul.f32 1.442695, %v621_v42 }
 0x502   : > { %1676 = vpow2.f32 %v625_v34 }
 0x505   : > { %v614_v51 = vpop.xlane.xlu2 %613 }
 0x506   : > { %v622_v49 = vsub.f32 %v1839_v48, %v614_v51 }
 0x508   : > { %v1677_v52 = vpop.eup %1676  ;;  %v627_v53 = vmul.f32 1.442695, %v622_v49  ;;  %v730_v54 = vpop.permute.xlu0 %729 }
 0x509   : > { %v735_v57 = vand.u32 %v730_v54, %v1968_v50  ;;  %v633_v44 = vsel %vm1937_vm11, %v1677_v52, 0.0 }
 0x50a   : > { %1678 = vpow2.f32 %v627_v53  ;;  %v637_v59 = vsel %vm428_vm1, %v633_v44, 0.0 }
 0x50b   : > { %744 = vmatpush.bf16.msra.mxu3 %v735_v57  ;;  %638 = vadd.xlane.f32.xlu1 %v637_v59  ;;  %1680 = vpow2.f32 %v631_v58  ;;  %v1735_v58 = vmov 32.0  }
 0x50d   : > { %v709_v61 = vpop.permute.xlu2 %708 }
 0x50e   : > { %v714_v48 = vand.u32 %v709_v61, %v1968_v50 }
 0x50f   : > { %687 = vrot.lane.b32.xlu0 %v1815_v29, %s1733_s7 }
 0x510   : > { %v1679_v56 = vpop.eup %1678  ;;  %723 = vmatpush.bf16.msra.mxu2 %v714_v48 }
 0x511   : > { %v634_v62 = vsel %vm1949_vm12, %v1679_v56, 0.0  ;;  %v1681_v1 = vpop.eup %1680 }
 0x512   : > { %v640_v63 = vsel %vm428_vm1, %v634_v62, 0.0  ;;  %v636_v5 = vsel %vm1925_vm10, %v1681_v1, 0.0 }
 0x513   : > { %641 = vadd.xlane.f32.xlu1 %v640_v63  ;;  %v646_v6 = vsel %vm428_vm1, %v636_v5, 0.0  ;;  %v1655_v63 = vld [vmem:[%s2333_s1 + $0x18] sm:$0xff] }
 0x514   : > { %957 = vmatpush.bf16.msrb.mxu2 %v1655_v63  ;;  %973 = vmatpush.bf16.msrb.mxu3 %v1655_v63 }
 0x51b   : > { %647 = vadd.xlane.f32.xlu1 %v646_v6 }
 0x534   : > { %661 = vrot.lane.b32.xlu1 %v1811_v21, %s1733_s7 }
 0x56e   : > { %v645_v7 = vpop.xlane.xlu0 %644 }
 0x56f   : > { %1682 = vrcp.f32 %v645_v7  ;;  %v1654_v7 = vld [vmem:[%s2333_s1 + $0x10] sm:$0xff] }
 0x570   : > { %958 = vmatpush.bf16.msrb.mxu2 %v1654_v7  ;;  %974 = vmatpush.bf16.msrb.mxu3 %v1654_v7 }
 0x575   : > { %v1683_v29 = vpop.eup %1682 }
 0x576   : > { %v655_v9 = vmul.f32 %v1683_v29, %v635_v39 }
 0x578   : > { %v659_v10 = vpack.c.bf16 %v655_v9, %v655_v9 }
 0x57a   : > { %1621 = vmatmul.msk.bf16.vlgmr.msra.gmra.mxu2 %vm663_vm4, %v659_v10 }
 0x57e   : > { %v639_v12 = vpop.xlane.xlu1 %638 }
 0x581   : > { %v688_v13 = vpop.permute.xlu0 %687 }
 0x582   : > { %v693_v14 = vand.u32 %v688_v13, %v1968_v50 }
 0x584   : > { %702 = vmatpush.bf16.msra.mxu1 %v693_v14 }
 0x586   : > { %v642_v15 = vpop.xlane.xlu1 %641 }
 0x587   : > { %1684 = vrcp.f32 %v642_v15 }
 0x588   : > { %941 = vmatpush.bf16.msrb.mxu1 %v1655_v63 }
 0x58c   : > { %942 = vmatpush.bf16.msrb.mxu1 %v1654_v7 }
 0x58d   : > { %v1685_v16 = vpop.eup %1684 }
 0x58e   : > { %v654_v46 = vmul.f32 %v1685_v16, %v634_v62  ;;  %v648_v17 = vpop.xlane.xlu1 %647 }
 0x58f   : > { %1686 = vrcp.f32 %v648_v17 }
 0x590   : > { %v658_v21 = vpack.c.bf16 %v654_v46, %v654_v46  ;;  %1688 = vrcp.f32 %v639_v12 }
 0x591   : > { %1690 = vrcp.f32 %v1735_v58 }
 0x592   : > { %1620 = vmatmul.msk.bf16.vlgmr.msra.gmra.mxu1 %vm663_vm4, %v658_v21 }
 0x595   : > { %v1687_v18 = vpop.eup %1686 }
 0x596   : > { %v656_v19 = vmul.f32 %v1687_v18, %v636_v5  ;;  %v1689_v22 = vpop.eup %1688 }
 0x597   : > { %v653_v23 = vmul.f32 %v1689_v22, %v633_v44  ;;  %v1691_v59 = vpop.eup %1690 }
 0x598   : > { %v660_v20 = vpack.c.bf16 %v656_v19, %v656_v19  ;;  %v782_v61 = vmul.f32 32.0, %v1691_v59  ;;  %vm786_vm14 = vweird.f32 %v1691_v59 }
 0x599   : > { %v657_v25 = vpack.c.bf16 %v653_v23, %v653_v23 }
 0x59a   : > { %1622 = vmatmul.msk.bf16.vlgmr.msra.gmra.mxu3 %vm663_vm4, %v660_v20  ;;  %v783_v48 = vsub.f32 1.0, %v782_v61  ;;  %v2037_v20 = vld [vmem:[%s2335_s3] ss:$0 sm:$0xff] }
 0x59c   : > { %v784_v56 = vmul.f32 %v1691_v59, %v783_v48 }
 0x59e   : > { %v785_v62 = vadd.f32 %v1691_v59, %v784_v56 }
 0x5a0   : > { %v2026_v1 = vsel %vm786_vm14, %v1691_v59, %v785_v62 }
 0x5a6   : > { %v662_v24 = vpop.permute.xlu1 %661 }
 0x5a7   : > { %v672_v55 = vand.u32 %v1968_v50, %v662_v24  ;;  %v2042_v24 = vld [vmem:[%s2336_s4] ss:$0 sm:$0xff] }
 0x5a9   : > { %681 = vmatpush.bf16.msra.mxu0 %v672_v55 }
 0x5ac   : > { %1619 = vmatmul.msk.bf16.vlgmr.msra.gmra.mxu0 %vm663_vm4, %v657_v25 }
 0x5ad   : > { %925 = vmatpush.bf16.msrb.mxu0 %v1655_v63 }
 0x5b1   : > { %926 = vmatpush.bf16.msrb.mxu0 %v1654_v7 }
 0x5fd   : > { %v725_v26 = vpop.f32.mrf.mxu2 }
 0x5fe   : > { %vm752_vm5 = vcmp.gt.f32.partialorder %v725_v26, 0.0  ;;  %v756_v27 = vmul.f32 0.01, %v725_v26 }
 0x600   : > { %v760_v28 = vsel %vm752_vm5, %v725_v26, %v756_v27 }
 0x601   : > { %v1992_v31 = vadd.f32 %v760_v28, %v1790_v3 }
 0x603   : > { %v775_v32 = vsel %vm768_vm6, %v1992_v31, 0.0  ;;  %v794_v0 = vmul.f32 %v1992_v31, %v1992_v31 }
 0x604   : > { %776 = vadd.xlane.f32.xlu2 %v775_v32 }
 0x605   : > { %v727_v33 = vpop.f32.mrf.mxu2  ;;  %v802_v35 = vsel %vm768_vm6, %v794_v0, 0.0 }
 0x606   : > { %803 = vadd.xlane.f32.xlu1 %v802_v35 }
 0x60f   : > { %v704_v36 = vpop.f32.mrf.mxu1 }
 0x610   : > { %v755_v40 = vmul.f32 0.01, %v704_v36  ;;  %vm751_vm8 = vcmp.gt.f32.partialorder %v704_v36, 0.0 }
 0x612   : > { %v759_v30 = vsel %vm751_vm8, %v704_v36, %v755_v40 }
 0x613   : > { %v2008_v45 = vadd.f32 %v759_v30, %v1800_v8 }
 0x615   : > { %v772_v52 = vsel %vm768_vm6, %v2008_v45, 0.0  ;;  %v793_v8 = vmul.f32 %v2008_v45, %v2008_v45 }
 0x617   : > { %v706_v11 = vpop.f32.mrf.mxu1  ;;  %v799_v44 = vsel %vm768_vm6, %v793_v8, 0.0 }
 0x61d   : > { %v746_v37 = vpop.f32.mrf.mxu3 }
 0x61e   : > { %vm753_vm7 = vcmp.gt.f32.partialorder %v746_v37, 0.0  ;;  %v757_v38 = vmul.f32 0.01, %v746_v37 }
 0x620   : > { %v761_v39 = vsel %vm753_vm7, %v746_v37, %v757_v38 }
 0x621   : > { %v2000_v3 = vadd.f32 %v761_v39, %v1792_v4 }
 0x623   : > { %v778_v41 = vsel %vm768_vm6, %v2000_v3, 0.0  ;;  %v795_v42 = vmul.f32 %v2000_v3, %v2000_v3 }
 0x624   : > { %779 = vadd.xlane.f32.xlu0 %v778_v41 }
 0x625   : > { %v748_v43 = vpop.f32.mrf.mxu3  ;;  %v805_v34 = vsel %vm768_vm6, %v795_v42, 0.0 }
 0x626   : > { %806 = vadd.xlane.f32.xlu2 %v805_v34 }
 0x629   : > { %v683_v51 = vpop.f32.mrf.mxu0 }
 0x62a   : > { %vm750_vm9 = vcmp.gt.f32.partialorder %v683_v51, 0.0  ;;  %v754_v4 = vmul.f32 0.01, %v683_v51 }
 0x62c   : > { %v758_v47 = vsel %vm750_vm9, %v683_v51, %v754_v4 }
 0x62d   : > { %v2011_v49 = vadd.f32 %v758_v47, %v1788_v2 }
 0x62e   : > { %773 = vadd.xlane.f32.xlu2 %v772_v52 }
 0x62f   : > { %v769_v53 = vsel %vm768_vm6, %v2011_v49, 0.0  ;;  %v792_v57 = vmul.f32 %v2011_v49, %v2011_v49 }
 0x630   : > { %770 = vadd.xlane.f32.xlu0 %v769_v53 }
 0x631   : > { %v685_v54 = vpop.f32.mrf.mxu0  ;;  %v796_v2 = vsel %vm768_vm6, %v792_v57, 0.0 }
 0x636   : > { %800 = vadd.xlane.f32.xlu2 %v799_v44 }
 0x638   : > { %797 = vadd.xlane.f32.xlu0 %v796_v2 }
 0x677   : > { %v777_v5 = vpop.xlane.xlu2 %776 }
 0x678   : > { %v790_v6 = vmul.f32 %v2026_v1, %v777_v5 }
 0x679   : > { %v804_v29 = vpop.xlane.xlu1 %803 }
 0x67a   : > { %v814_v9 = vmul.f32 %v790_v6, %v790_v6  ;;  %v810_v10 = vmul.f32 %v804_v29, %v2026_v1  ;;  %v826_v19 = vsub.f32 %v1992_v31, %v790_v6 }
 0x67c   : > { %v818_v12 = vsub.f32 %v810_v10, %v814_v9 }
 0x67e   : > { %v822_v13 = vmax.f32 %v818_v12, 0.0 }
 0x680   : > { %v830_v14 = vadd.f32 1e-05, %v822_v13 }
 0x682   : > { %1692 = vrsqrt.f32 %v830_v14  ;;  %vm858_vm15 = vweird.f32 %v830_v14 }
 0x688   : > { %v1693_v15 = vpop.eup %1692 }
 0x689   : > { %v853_v16 = vmul.f32 %v1693_v15, %v830_v14  ;;  %vm859_vm10 = vweird.f32 %v1693_v15 }
 0x68a   : > { %vm860_vm11 = vmor %vm858_vm15, %vm859_vm10 }
 0x68b   : > { %v854_v46 = vmul.f32 %v1693_v15, %v853_v16 }
 0x68d   : > { %v855_v17 = vmul.f32 0.5, %v854_v46 }
 0x68f   : > { %v856_v21 = vsub.f32 1.5, %v855_v17 }
 0x691   : > { %v857_v18 = vmul.f32 %v1693_v15, %v856_v21 }
 0x693   : > { %v861_v22 = vsel %vm860_vm11, %v1693_v15, %v857_v18 }
 0x694   : > { %v874_v23 = vmul.f32 %v861_v22, %v826_v19 }
 0x696   : > { %v881_v55 = vmul.f32 %v2037_v20, %v874_v23 }
 0x697   : > { %v780_v25 = vpop.xlane.xlu0 %779 }
 0x698   : > { %v791_v26 = vmul.f32 %v2026_v1, %v780_v25  ;;  %v2047_v27 = vadd.f32 %v2042_v24, %v881_v55 }
 0x699   : > { %v807_v28 = vpop.xlane.xlu2 %806 }
 0x69a   : > { %v815_v31 = vmul.f32 %v791_v26, %v791_v26  ;;  %v811_v32 = vmul.f32 %v807_v28, %v2026_v1  ;;  %v892_v0 = vpack.c.bf16 %v2047_v27, %v2047_v27  ;;  %v827_v59 = vsub.f32 %v2000_v3, %v791_v26 }
 0x69c   : > { %v819_v33 = vsub.f32 %v811_v32, %v815_v31  ;;  %1638 = vmatmul.msk.bf16.vlgmr.msrb.gmra.mxu2 %vm259_vm0, %v892_v0 }
 0x69e   : > { %v823_v35 = vmax.f32 %v819_v33, 0.0 }
 0x6a0   : > { %v831_v36 = vadd.f32 1e-05, %v823_v35 }
 0x6a1   : > { %v774_v11 = vpop.xlane.xlu2 %773 }
 0x6a2   : > { %1694 = vrsqrt.f32 %v831_v36  ;;  %v789_v38 = vmul.f32 %v2026_v1, %v774_v11  ;;  %vm868_vm12 = vweird.f32 %v831_v36 }
 0x6a3   : > { %v771_v37 = vpop.xlane.xlu0 %770 }
 0x6a4   : > { %v788_v40 = vmul.f32 %v2026_v1, %v771_v37  ;;  %v813_v43 = vmul.f32 %v789_v38, %v789_v38  ;;  %v825_v46 = vsub.f32 %v2008_v45, %v789_v38 }
 0x6a6   : > { %v812_v4 = vmul.f32 %v788_v40, %v788_v40  ;;  %v824_v18 = vsub.f32 %v2011_v49, %v788_v40 }
 0x6a8   : > { %v1695_v39 = vpop.eup %1694 }
 0x6a9   : > { %v863_v41 = vmul.f32 %v1695_v39, %v831_v36  ;;  %v801_v42 = vpop.xlane.xlu2 %800  ;;  %vm869_vm2 = vweird.f32 %v1695_v39 }
 0x6aa   : > { %v809_v34 = vmul.f32 %v801_v42, %v2026_v1  ;;  %vm870_vm13 = vmor %vm868_vm12, %vm869_vm2 }
 0x6ab   : > { %v864_v30 = vmul.f32 %v1695_v39, %v863_v41  ;;  %v798_v51 = vpop.xlane.xlu0 %797 }
 0x6ac   : > { %v817_v47 = vsub.f32 %v809_v34, %v813_v43  ;;  %v808_v52 = vmul.f32 %v798_v51, %v2026_v1 }
 0x6ad   : > { %v865_v53 = vmul.f32 0.5, %v864_v30 }
 0x6ae   : > { %v821_v54 = vmax.f32 %v817_v47, 0.0  ;;  %v816_v8 = vsub.f32 %v808_v52, %v812_v4 }
 0x6af   : > { %v866_v57 = vsub.f32 1.5, %v865_v53 }
 0x6b0   : > { %v829_v44 = vadd.f32 1e-05, %v821_v54  ;;  %v820_v2 = vmax.f32 %v816_v8, 0.0 }
 0x6b1   : > { %v867_v58 = vmul.f32 %v1695_v39, %v866_v57 }
 0x6b2   : > { %1696 = vrsqrt.f32 %v829_v44  ;;  %v828_v61 = vadd.f32 1e-05, %v820_v2  ;;  %vm848_vm5 = vweird.f32 %v829_v44 }
 0x6b3   : > { %v871_v48 = vsel %vm870_vm13, %v1695_v39, %v867_v58 }
 0x6b4   : > { %v875_v56 = vmul.f32 %v871_v48, %v827_v59  ;;  %1698 = vrsqrt.f32 %v828_v61  ;;  %vm838_vm9 = vweird.f32 %v828_v61 }
 0x6b6   : > { %v882_v62 = vmul.f32 %v2037_v20, %v875_v56 }
 0x6b8   : > { %v1697_v63 = vpop.eup %1696  ;;  %v2060_v5 = vadd.f32 %v2042_v24, %v882_v62 }
 0x6b9   : > { %v843_v6 = vmul.f32 %v1697_v63, %v829_v44  ;;  %vm849_vm3 = vweird.f32 %v1697_v63 }
 0x6ba   : > { %v1699_v7 = vpop.eup %1698  ;;  %v893_v29 = vpack.c.bf16 %v2060_v5, %v2060_v5  ;;  %vm850_vm8 = vmor %vm848_vm5, %vm849_vm3 }
 0x6bb   : > { %v844_v9 = vmul.f32 %v1697_v63, %v843_v6  ;;  %v833_v10 = vmul.f32 %v1699_v7, %v828_v61  ;;  %vm839_vm7 = vweird.f32 %v1699_v7 }
 0x6bc   : > { %1639 = vmatmul.msk.bf16.vlgmr.msrb.gmra.mxu3 %vm259_vm0, %v893_v29  ;;  %vm840_vm14 = vmor %vm838_vm9, %vm839_vm7 }
 0x6bd   : > { %v845_v3 = vmul.f32 0.5, %v844_v9  ;;  %v834_v12 = vmul.f32 %v1699_v7, %v833_v10 }
 0x6bf   : > { %v846_v13 = vsub.f32 1.5, %v845_v3  ;;  %v835_v14 = vmul.f32 0.5, %v834_v12 }
 0x6c1   : > { %v847_v15 = vmul.f32 %v1697_v63, %v846_v13  ;;  %v836_v16 = vsub.f32 1.5, %v835_v14 }
 0x6c3   : > { %v851_v17 = vsel %vm850_vm8, %v1697_v63, %v847_v15  ;;  %v837_v21 = vmul.f32 %v1699_v7, %v836_v16 }
 0x6c4   : > { %v873_v19 = vmul.f32 %v851_v17, %v825_v46 }
 0x6c5   : > { %v841_v22 = vsel %vm840_vm14, %v1699_v7, %v837_v21 }
 0x6c6   : > { %v880_v23 = vmul.f32 %v2037_v20, %v873_v19  ;;  %v872_v55 = vmul.f32 %v841_v22, %v824_v18 }
 0x6c8   : > { %v879_v25 = vmul.f32 %v2037_v20, %v872_v55  ;;  %v2070_v26 = vadd.f32 %v2042_v24, %v880_v23  ;;  %v1671_v20 = vld [vmem:[%s2334_s2 + $0x1] ss:$0 sm:$0xff] }
 0x6ca   : > { %v891_v45 = vpack.c.bf16 %v2070_v26, %v2070_v26  ;;  %v2075_v28 = vadd.f32 %v2042_v24, %v879_v25 }
 0x6cc   : > { %1637 = vmatmul.msk.bf16.vlgmr.msrb.gmra.mxu1 %vm259_vm0, %v891_v45  ;;  %v890_v49 = vpack.c.bf16 %v2075_v28, %v2075_v28 }
 0x6ce   : > { %1636 = vmatmul.msk.bf16.vlgmr.msrb.gmra.mxu0 %vm259_vm0, %v890_v49 }
 0x71f   : > { %v960_v31 = vpop.f32.mrf.mxu2 }
 0x720   : > { %v961_v32 = vadd.f32 %v1671_v20, %v960_v31 }
 0x722   : > { %v982_v0 = vpack.c.bf16 %v961_v32, %v961_v32 }
 0x724   : > { %v1033_v33 = vunpack.c.l.b16 %v982_v0 }
 0x726   : > { %v2084_v35 = vpack.c.b16 %v1033_v33, %v1033_v33 }
 0x727   : > { %v962_v36 = vpop.f32.mrf.mxu2 }
 0x728   : > { %1035 = vrot.lane.b32.xlu1 %v2084_v35, %s1732_s6 }
 0x73f   : > { %v976_v24 = vpop.f32.mrf.mxu3 }
 0x740   : > { %v977_v11 = vadd.f32 %v1671_v20, %v976_v24 }
 0x742   : > { %v983_v37 = vpack.c.bf16 %v977_v11, %v977_v11 }
 0x744   : > { %v1057_v38 = vunpack.c.l.b16 %v983_v37 }
 0x746   : > { %v2088_v39 = vpack.c.b16 %v1057_v38, %v1057_v38 }
 0x747   : > { %v978_v40 = vpop.f32.mrf.mxu3 }
 0x748   : > { %1059 = vrot.lane.b32.xlu0 %v2088_v39, %s1732_s6 }
 0x749   : > { %v944_v41 = vpop.f32.mrf.mxu1 }
 0x74a   : > { %v945_v42 = vadd.f32 %v1671_v20, %v944_v41 }
 0x74b   : > { %v928_v43 = vpop.f32.mrf.mxu0 }
 0x74c   : > { %v981_v34 = vpack.c.bf16 %v945_v42, %v945_v42  ;;  %v929_v30 = vadd.f32 %v1671_v20, %v928_v43 }
 0x74e   : > { %v1009_v51 = vunpack.c.l.b16 %v981_v34  ;;  %v980_v4 = vpack.c.bf16 %v929_v30, %v929_v30 }
 0x750   : > { %v2092_v47 = vpack.c.b16 %v1009_v51, %v1009_v51  ;;  %v985_v52 = vunpack.c.l.b16 %v980_v4 }
 0x751   : > { %v946_v53 = vpop.f32.mrf.mxu1 }
 0x752   : > { %v2094_v54 = vpack.c.b16 %v985_v52, %v985_v52  ;;  %1011 = vrot.lane.b32.xlu0 %v2092_v47, %s1732_s6 }
 0x753   : > { %v930_v8 = vpop.f32.mrf.mxu0 }
 0x754   : > { %987 = vrot.lane.b32.xlu2 %v2094_v54, %s1732_s6 }
 0x79a   : > { %v1036_v57 = vpop.permute.xlu1 %1035 }
 0x79b   : > { %v1041_v44 = vsel %vm259_vm0, %v1036_v57, 0 }
 0x79c   : > { %1050 = vmatpush.bf16.xpose.msra.mxu2 %v1041_v44 }
 0x7a3   : > { %1642 = vmatmul.msk.bf16.vlgmr.msra.gmra.mxu2 %vm259_vm0, %v982_v0 }
 0x7ae   : > { %v988_v2 = vpop.permute.xlu2 %987 }
 0x7af   : > { %v993_v58 = vsel %vm259_vm0, %v988_v2, 0 }
 0x7b0   : > { %1002 = vmatpush.bf16.xpose.msra.mxu0 %v993_v58 }
 0x7b7   : > { %1640 = vmatmul.msk.bf16.vlgmr.msra.gmra.mxu0 %vm259_vm0, %v980_v4 }
 0x7ba   : > { %v1060_v59 = vpop.permute.xlu0 %1059 }
 0x7bb   : > { %v1065_v61 = vsel %vm259_vm0, %v1060_v59, 0 }
 0x7bc   : > { %1074 = vmatpush.bf16.xpose.msra.mxu3 %v1065_v61 }
 0x7c3   : > { %1643 = vmatmul.msk.bf16.vlgmr.msra.gmra.mxu3 %vm259_vm0, %v983_v37 }
 0x7c4   : > { %v1012_v48 = vpop.permute.xlu0 %1011 }
 0x7c5   : > { %v1017_v56 = vsel %vm259_vm0, %v1012_v48, 0 }
 0x7c6   : > { %1026 = vmatpush.bf16.xpose.msra.mxu1 %v1017_v56 }
 0x7cd   : > { %1641 = vmatmul.msk.bf16.vlgmr.msra.gmra.mxu1 %vm259_vm0, %v981_v34 }
 0x826   : > { %v1052_v62 = vpop.f32.mrf.mxu2 }
 0x827   : > { %v2108_v63 = vmul.f32 0.17677669, %v1052_v62 }
 0x829   : > { %v1090_v6 = vsel %vm428_vm1, %v2108_v63, -inf }
 0x82a   : > { %1091 = vmax.xlane.f32.xlu1 %v1090_v6 }
 0x82e   : > { %v1054_v7 = vpop.f32.mrf.mxu2 }
 0x834   : > { %v1004_v29 = vpop.f32.mrf.mxu0 }
 0x835   : > { %v2112_v9 = vmul.f32 0.17677669, %v1004_v29 }
 0x837   : > { %v1084_v10 = vsel %vm428_vm1, %v2112_v9, -inf }
 0x838   : > { %1085 = vmax.xlane.f32.xlu0 %v1084_v10 }
 0x83c   : > { %v1006_v3 = vpop.f32.mrf.mxu0 }
 0x846   : > { %v1076_v12 = vpop.f32.mrf.mxu3 }
 0x847   : > { %v2116_v13 = vmul.f32 0.17677669, %v1076_v12 }
 0x849   : > { %v1093_v14 = vsel %vm428_vm1, %v2116_v13, -inf }
 0x84a   : > { %1094 = vmax.xlane.f32.xlu2 %v1093_v14  ;;  %v1028_v15 = vpop.f32.mrf.mxu1 }
 0x84b   : > { %v2120_v16 = vmul.f32 0.17677669, %v1028_v15 }
 0x84d   : > { %v1087_v46 = vsel %vm428_vm1, %v2120_v16, -inf }
 0x84e   : > { %v1078_v17 = vpop.f32.mrf.mxu3  ;;  %1088 = vmax.xlane.f32.xlu1 %v1087_v46 }
 0x852   : > { %v1030_v21 = vpop.f32.mrf.mxu1 }
 0x89d   : > { %v1092_v18 = vpop.xlane.xlu1 %1091 }
 0x89e   : > { %vm1098_vm0 = vcmp.eq.f32.partialorder %v2108_v63, %v1092_v18 }
 0x89f   : > { %v1102_v19 = vsel %vm1098_vm0, %v1851_v60, 3 }
 0x8a0   : > { %v1134_v22 = vsel %vm428_vm1, %v1102_v19, 2147483647 }
 0x8a1   : > { %v1136_v23 = vshra.s32 %v1134_v22, 16  ;;  %v1135_v42 = vand.u32 65535, %v1134_v22 }
 0x8a3   : > { %v1138_v55 = vcvt.s32.f32 %v1136_v23  ;;  %v1137_v34 = vcvt.s32.f32 %v1135_v42 }
 0x8a5   : > { %1139 = vmin.xlane.f32.xlu2 %v1138_v55 }
 0x8ab   : > { %v1086_v25 = vpop.xlane.xlu0 %1085 }
 0x8ac   : > { %vm1096_vm10 = vcmp.eq.f32.partialorder %v2112_v9, %v1086_v25 }
 0x8ad   : > { %v1100_v45 = vsel %vm1096_vm10, %v1851_v60, 3 }
 0x8ae   : > { %v1104_v49 = vsel %vm428_vm1, %v1100_v45, 2147483647 }
 0x8af   : > { %v1106_v20 = vshra.s32 %v1104_v49, 16  ;;  %v1105_v51 = vand.u32 65535, %v1104_v49 }
 0x8b1   : > { %v1108_v31 = vcvt.s32.f32 %v1106_v20  ;;  %v1107_v52 = vcvt.s32.f32 %v1105_v51 }
 0x8b3   : > { %1109 = vmin.xlane.f32.xlu1 %v1108_v31 }
 0x8bd   : > { %v1095_v32 = vpop.xlane.xlu2 %1094 }
 0x8be   : > { %vm1099_vm15 = vcmp.eq.f32.partialorder %v2116_v13, %v1095_v32 }
 0x8bf   : > { %v1103_v0 = vsel %vm1099_vm15, %v1851_v60, 3 }
 0x8c0   : > { %v1149_v33 = vsel %vm428_vm1, %v1103_v0, 2147483647 }
 0x8c1   : > { %v1089_v36 = vpop.xlane.xlu1 %1088  ;;  %v1151_v24 = vshra.s32 %v1149_v33, 16  ;;  %v1150_v8 = vand.u32 65535, %v1149_v33 }
 0x8c2   : > { %vm1097_vm11 = vcmp.eq.f32.partialorder %v2120_v16, %v1089_v36 }
 0x8c3   : > { %v1101_v11 = vsel %vm1097_vm11, %v1851_v60, 3  ;;  %v1153_v37 = vcvt.s32.f32 %v1151_v24  ;;  %v1152_v44 = vcvt.s32.f32 %v1150_v8 }
 0x8c4   : > { %v1119_v38 = vsel %vm428_vm1, %v1101_v11, 2147483647 }
 0x8c5   : > { %1154 = vmin.xlane.f32.xlu0 %v1153_v37  ;;  %v1121_v40 = vshra.s32 %v1119_v38, 16  ;;  %v1120_v2 = vand.u32 65535, %v1119_v38 }
 0x8c7   : > { %v1123_v41 = vcvt.s32.f32 %v1121_v40  ;;  %v1122_v61 = vcvt.s32.f32 %v1120_v2 }
 0x8c9   : > { %1124 = vmin.xlane.f32.xlu2 %v1123_v41 }
 0x918   : > { %v1140_v43 = vpop.xlane.xlu2 %1139 }
 0x919   : > { %vm1141_vm2 = vcmp.eq.f32.partialorder %v1138_v55, %v1140_v43  ;;  %v1146_v56 = vcvt.f32.s32 %v1140_v43 }
 0x91a   : > { %v1142_v30 = vsel %vm1141_vm2, %v1137_v34, inf }
 0x91b   : > { %1143 = vmin.xlane.f32.xlu0 %v1142_v30  ;;  %v1147_v6 = vshll.u32 %v1146_v56, 16 }
 0x926   : > { %v1110_v4 = vpop.xlane.xlu1 %1109 }
 0x927   : > { %vm1111_vm12 = vcmp.eq.f32.partialorder %v1108_v31, %v1110_v4  ;;  %v1116_v12 = vcvt.f32.s32 %v1110_v4 }
 0x928   : > { %v1112_v53 = vsel %vm1111_vm12, %v1107_v52, inf }
 0x929   : > { %1113 = vmin.xlane.f32.xlu2 %v1112_v53  ;;  %v1117_v15 = vshll.u32 %v1116_v12, 16 }
 0x938   : > { %v1155_v57 = vpop.xlane.xlu0 %1154 }
 0x939   : > { %vm1156_vm13 = vcmp.eq.f32.partialorder %v1153_v37, %v1155_v57  ;;  %v1161_v19 = vcvt.f32.s32 %v1155_v57 }
 0x93a   : > { %v1157_v58 = vsel %vm1156_vm13, %v1152_v44, inf }
 0x93b   : > { %1158 = vmin.xlane.f32.xlu1 %v1157_v58  ;;  %v1162_v23 = vshll.u32 %v1161_v19, 16 }
 0x93c   : > { %v1125_v59 = vpop.xlane.xlu2 %1124 }
 0x93d   : > { %vm1126_vm3 = vcmp.eq.f32.partialorder %v1123_v41, %v1125_v59  ;;  %v1131_v55 = vcvt.f32.s32 %v1125_v59 }
 0x93e   : > { %v1127_v48 = vsel %vm1126_vm3, %v1122_v61, inf }
 0x93f   : > { %1128 = vmin.xlane.f32.xlu0 %v1127_v48  ;;  %v1132_v20 = vshll.u32 %v1131_v55, 16 }
 0x98e   : > { %v1144_v62 = vpop.xlane.xlu0 %1143 }
 0x98f   : > { %v1145_v7 = vcvt.f32.s32 %v1144_v62 }
 0x991   : > { %v2136_v29 = vadd.s32 %v1147_v6, %v1145_v7 }
 0x993   : > { %vm1166_vm5 = vcmp.eq.s32.totalorder %v1851_v60, %v2136_v29 }
 0x994   : > { %v1170_v10 = vsel %vm1166_vm5, -1e+30, %v2108_v63 }
 0x995   : > { %v1178_v3 = vsel %vm428_vm1, %v1170_v10, -inf }
 0x996   : > { %1179 = vmax.xlane.f32.xlu1 %v1178_v3 }
 0x99c   : > { %v1114_v14 = vpop.xlane.xlu2 %1113 }
 0x99d   : > { %v1115_v46 = vcvt.f32.s32 %v1114_v14 }
 0x99f   : > { %v2145_v17 = vadd.s32 %v1117_v15, %v1115_v46 }
 0x9a1   : > { %vm1164_vm7 = vcmp.eq.s32.totalorder %v1851_v60, %v2145_v17 }
 0x9a2   : > { %v1168_v21 = vsel %vm1164_vm7, -1e+30, %v2112_v9 }
 0x9a3   : > { %v1172_v18 = vsel %vm428_vm1, %v1168_v21, -inf }
 0x9a4   : > { %1173 = vmax.xlane.f32.xlu0 %v1172_v18 }
 0x9ae   : > { %v1159_v22 = vpop.xlane.xlu1 %1158 }
 0x9af   : > { %v1160_v25 = vcvt.f32.s32 %v1159_v22 }
 0x9b1   : > { %v2154_v45 = vadd.s32 %v1162_v23, %v1160_v25 }
 0x9b2   : > { %v1129_v49 = vpop.xlane.xlu0 %1128 }
 0x9b3   : > { %v1130_v31 = vcvt.f32.s32 %v1129_v49  ;;  %vm1167_vm8 = vcmp.eq.s32.totalorder %v1851_v60, %v2154_v45 }
 0x9b4   : > { %v1171_v32 = vsel %vm1167_vm8, -1e+30, %v2116_v13 }
 0x9b5   : > { %v2162_v0 = vadd.s32 %v1132_v20, %v1130_v31  ;;  %v1181_v33 = vsel %vm428_vm1, %v1171_v32, -inf }
 0x9b6   : > { %1182 = vmax.xlane.f32.xlu2 %v1181_v33 }
 0x9b7   : > { %vm1165_vm9 = vcmp.eq.s32.totalorder %v1851_v60, %v2162_v0 }
 0x9b8   : > { %v1169_v36 = vsel %vm1165_vm9, -1e+30, %v2120_v16 }
 0x9b9   : > { %v1175_v24 = vsel %vm428_vm1, %v1169_v36, -inf }
 0x9ba   : > { %1176 = vmax.xlane.f32.xlu1 %v1175_v24 }
 0xa09   : > { %v1180_v11 = vpop.xlane.xlu1 %1179 }
 0xa0a   : > { %vm1186_vm14 = vcmp.eq.f32.partialorder %v1170_v10, %v1180_v11 }
 0xa0b   : > { %v1190_v37 = vsel %vm1186_vm14, %v1851_v60, 3 }
 0xa0c   : > { %v1222_v38 = vsel %vm428_vm1, %v1190_v37, 2147483647 }
 0xa0d   : > { %v1224_v40 = vshra.s32 %v1222_v38, 16  ;;  %v1223_v48 = vand.u32 65535, %v1222_v38 }
 0xa0f   : > { %v1226_v41 = vcvt.s32.f32 %v1224_v40  ;;  %v1225_v62 = vcvt.s32.f32 %v1223_v48 }
 0xa11   : > { %1227 = vmin.xlane.f32.xlu2 %v1226_v41 }
 0xa17   : > { %v1174_v42 = vpop.xlane.xlu0 %1173 }
 0xa18   : > { %vm1184_vm0 = vcmp.eq.f32.partialorder %v1168_v21, %v1174_v42 }
 0xa19   : > { %v1188_v43 = vsel %vm1184_vm0, %v1851_v60, 3 }
 0xa1a   : > { %v1192_v34 = vsel %vm428_vm1, %v1188_v43, 2147483647 }
 0xa1b   : > { %v1194_v30 = vshra.s32 %v1192_v34, 16  ;;  %v1193_v7 = vand.u32 65535, %v1192_v34 }
 0xa1d   : > { %v1196_v51 = vcvt.s32.f32 %v1194_v30  ;;  %v1195_v3 = vcvt.s32.f32 %v1193_v7 }
 0xa1f   : > { %1197 = vmin.xlane.f32.xlu1 %v1196_v51 }
 0xa29   : > { %v1183_v4 = vpop.xlane.xlu2 %1182 }
 0xa2a   : > { %vm1187_vm10 = vcmp.eq.f32.partialorder %v1171_v32, %v1183_v4 }
 0xa2b   : > { %v1191_v52 = vsel %vm1187_vm10, %v1851_v60, 3 }
 0xa2c   : > { %v1237_v53 = vsel %vm428_vm1, %v1191_v52, 2147483647 }
 0xa2d   : > { %v1177_v8 = vpop.xlane.xlu1 %1176  ;;  %v1239_v57 = vshra.s32 %v1237_v53, 16  ;;  %v1238_v14 = vand.u32 65535, %v1237_v53 }
 0xa2e   : > { %vm1185_vm15 = vcmp.eq.f32.partialorder %v1169_v36, %v1177_v8 }
 0xa2f   : > { %v1189_v44 = vsel %vm1185_vm15, %v1851_v60, 3  ;;  %v1241_v2 = vcvt.s32.f32 %v1239_v57  ;;  %v1240_v46 = vcvt.s32.f32 %v1238_v14 }
 0xa30   : > { %v1207_v58 = vsel %vm428_vm1, %v1189_v44, 2147483647 }
 0xa31   : > { %1242 = vmin.xlane.f32.xlu0 %v1241_v2  ;;  %v1209_v59 = vshra.s32 %v1207_v58, 16  ;;  %v1208_v21 = vand.u32 65535, %v1207_v58 }
 0xa33   : > { %v1211_v61 = vcvt.s32.f32 %v1209_v59  ;;  %v1210_v22 = vcvt.s32.f32 %v1208_v21 }
 0xa35   : > { %1212 = vmin.xlane.f32.xlu2 %v1211_v61 }
 0xa84   : > { %v1228_v56 = vpop.xlane.xlu2 %1227 }
 0xa85   : > { %vm1229_vm11 = vcmp.eq.f32.partialorder %v1226_v41, %v1228_v56  ;;  %v1234_v55 = vcvt.f32.s32 %v1228_v56 }
 0xa86   : > { %v1230_v6 = vsel %vm1229_vm11, %v1225_v62, inf }
 0xa87   : > { %1231 = vmin.xlane.f32.xlu0 %v1230_v6  ;;  %v1235_v49 = vshll.u32 %v1234_v55, 16 }
 0xa92   : > { %v1198_v10 = vpop.xlane.xlu1 %1197 }
 0xa93   : > { %vm1199_vm2 = vcmp.eq.f32.partialorder %v1196_v51, %v1198_v10  ;;  %v1204_v24 = vcvt.f32.s32 %v1198_v10 }
 0xa94   : > { %v1200_v12 = vsel %vm1199_vm2, %v1195_v3, inf }
 0xa95   : > { %1201 = vmin.xlane.f32.xlu2 %v1200_v12  ;;  %v1205_v37 = vshll.u32 %v1204_v24, 16 }
 0xaa4   : > { %v1243_v15 = vpop.xlane.xlu0 %1242 }
 0xaa5   : > { %vm1244_vm12 = vcmp.eq.f32.partialorder %v1241_v2, %v1243_v15  ;;  %v1249_v43 = vcvt.f32.s32 %v1243_v15 }
 0xaa6   : > { %v1245_v18 = vsel %vm1244_vm12, %v1240_v46, inf }
 0xaa7   : > { %1246 = vmin.xlane.f32.xlu1 %v1245_v18  ;;  %v1250_v30 = vshll.u32 %v1249_v43, 16 }
 0xaa8   : > { %v1213_v19 = vpop.xlane.xlu2 %1212 }
 0xaa9   : > { %vm1214_vm13 = vcmp.eq.f32.partialorder %v1211_v61, %v1213_v19  ;;  %v1219_v51 = vcvt.f32.s32 %v1213_v19 }
 0xaaa   : > { %v1215_v23 = vsel %vm1214_vm13, %v1210_v22, inf }
 0xaab   : > { %1216 = vmin.xlane.f32.xlu0 %v1215_v23  ;;  %v1220_v8 = vshll.u32 %v1219_v51, 16 }
 0xafa   : > { %v1232_v25 = vpop.xlane.xlu0 %1231 }
 0xafb   : > { %v1233_v20 = vcvt.f32.s32 %v1232_v25 }
 0xafd   : > { %v1236_v31 = vadd.s32 %v1235_v49, %v1233_v20 }
 0xaff   : > { %vm1254_vm3 = vcmp.eq.s32.totalorder %v1851_v60, %v1236_v31 }
 0xb00   : > { %vm2184_vm14 = vmor %vm1166_vm5, %vm1254_vm3 }
 0xb01   : > { %v1262_v33 = vsel %vm2184_vm14, %v2108_v63, -1e+30 }
 0xb02   : > { %v1270_v36 = vsel %vm428_vm1, %v1262_v33, -inf }
 0xb03   : > { %1271 = vmax.xlane.f32.xlu1 %v1270_v36 }
 0xb08   : > { %v1202_v11 = vpop.xlane.xlu2 %1201 }
 0xb09   : > { %v1203_v38 = vcvt.f32.s32 %v1202_v11 }
 0xb0b   : > { %v1206_v40 = vadd.s32 %v1205_v37, %v1203_v38 }
 0xb0d   : > { %vm1252_vm0 = vcmp.eq.s32.totalorder %v1851_v60, %v1206_v40 }
 0xb0e   : > { %vm2196_vm5 = vmor %vm1164_vm7, %vm1252_vm0 }
 0xb0f   : > { %v1260_v41 = vsel %vm2196_vm5, %v2112_v9, -1e+30 }
 0xb10   : > { %v1264_v42 = vsel %vm428_vm1, %v1260_v41, -inf }
 0xb11   : > { %1265 = vmax.xlane.f32.xlu0 %v1264_v42 }
 0xb1a   : > { %v1247_v34 = vpop.xlane.xlu1 %1246 }
 0xb1b   : > { %v1248_v4 = vcvt.f32.s32 %v1247_v34 }
 0xb1d   : > { %v1251_v52 = vadd.s32 %v1250_v30, %v1248_v4 }
 0xb1e   : > { %v1217_v53 = vpop.xlane.xlu0 %1216 }
 0xb1f   : > { %v1218_v17 = vcvt.f32.s32 %v1217_v53  ;;  %vm1255_vm7 = vcmp.eq.s32.totalorder %v1851_v60, %v1251_v52 }
 0xb20   : > { %vm2208_vm10 = vmor %vm1167_vm8, %vm1255_vm7 }
 0xb21   : > { %v1221_v44 = vadd.s32 %v1220_v8, %v1218_v17  ;;  %v1263_v2 = vsel %vm2208_vm10, %v2116_v13, -1e+30 }
 0xb22   : > { %v1273_v58 = vsel %vm428_vm1, %v1263_v2, -inf }
 0xb23   : > { %1274 = vmax.xlane.f32.xlu2 %v1273_v58  ;;  %vm1253_vm15 = vcmp.eq.s32.totalorder %v1851_v60, %v1221_v44 }
 0xb24   : > { %vm2220_vm11 = vmor %vm1165_vm9, %vm1253_vm15 }
 0xb25   : > { %1358 = vrot.lane.b32.xlu0 %v2084_v35, %s1733_s7  ;;  %v1261_v45 = vsel %vm2220_vm11, %v2120_v16, -1e+30 }
 0xb26   : > { %v1267_v61 = vsel %vm428_vm1, %v1261_v45, -inf }
 0xb27   : > { %1268 = vmax.xlane.f32.xlu1 %v1267_v61 }
 0xb76   : > { %v1272_v7 = vpop.xlane.xlu1 %1271 }
 0xb84   : > { %v1266_v48 = vpop.xlane.xlu0 %1265 }
 0xb85   : > { %v1276_v56 = vsub.f32 %v2112_v9, %v1266_v48  ;;  %v1278_v9 = vsub.f32 %v2108_v63, %v1272_v7 }
 0xb87   : > { %v1280_v62 = vmul.f32 1.442695, %v1276_v56  ;;  %v1284_v18 = vmul.f32 1.442695, %v1278_v9 }
 0xb89   : > { %1700 = vpow2.f32 %v1280_v62 }
 0xb8f   : > { %v1701_v60 = vpop.eup %1700 }
 0xb90   : > { %v1288_v0 = vsel %vm2196_vm5, %v1701_v60, 0.0 }
 0xb91   : > { %v1292_v6 = vsel %vm428_vm1, %v1288_v0, 0.0 }
 0xb92   : > { %1293 = vadd.xlane.f32.xlu1 %v1292_v6 }
 0xb96   : > { %v1275_v35 = vpop.xlane.xlu2 %1274 }
 0xb97   : > { %v1279_v10 = vsub.f32 %v2116_v13, %v1275_v35  ;;  %v1359_v3 = vpop.permute.xlu0 %1358 }
 0xb98   : > { %v1364_v12 = vand.u32 %v1359_v3, %v1968_v50 }
 0xb99   : > { %v1286_v14 = vmul.f32 1.442695, %v1279_v10 }
 0xb9a   : > { %v1269_v15 = vpop.xlane.xlu1 %1268  ;;  %1373 = vmatpush.bf16.msrb.mxu2 %v1364_v12 }
 0xb9b   : > { %1702 = vpow2.f32 %v1286_v14  ;;  %v1277_v46 = vsub.f32 %v2120_v16, %v1269_v15 }
 0xb9d   : > { %v1282_v21 = vmul.f32 1.442695, %v1277_v46 }
 0xb9f   : > { %1704 = vpow2.f32 %v1282_v21 }
 0xba0   : > { %1706 = vpow2.f32 %v1284_v18 }
 0xba1   : > { %v1703_v19 = vpop.eup %1702 }
 0xba2   : > { %v1291_v22 = vsel %vm2208_vm10, %v1703_v19, 0.0 }
 0xba3   : > { %v1301_v13 = vsel %vm428_vm1, %v1291_v22, 0.0 }
 0xba4   : > { %1302 = vadd.xlane.f32.xlu0 %v1301_v13 }
 0xba5   : > { %v1705_v23 = vpop.eup %1704 }
 0xba6   : > { %v1289_v55 = vsel %vm2220_vm11, %v1705_v23, 0.0  ;;  %v1707_v25 = vpop.eup %1706 }
 0xba7   : > { %v1295_v63 = vsel %vm428_vm1, %v1289_v55, 0.0  ;;  %v1290_v16 = vsel %vm2184_vm14, %v1707_v25, 0.0 }
 0xba8   : > { %1296 = vadd.xlane.f32.xlu2 %v1295_v63  ;;  %v1298_v49 = vsel %vm428_vm1, %v1290_v16, 0.0 }
 0xbab   : > { %1379 = vrot.lane.b32.xlu1 %v2088_v39, %s1733_s7 }
 0xbb0   : > { %1299 = vadd.xlane.f32.xlu2 %v1298_v49 }
 0xbb8   : > { %1337 = vrot.lane.b32.xlu0 %v2092_v47, %s1733_s7 }
 0xbc8   : > { %1316 = vrot.lane.b32.xlu2 %v2094_v54, %s1733_s7 }
 0xc05   : > { %v1294_v20 = vpop.xlane.xlu1 %1293 }
 0xc17   : > { %v1303_v31 = vpop.xlane.xlu0 %1302 }
 0xc18   : > { %1708 = vrcp.f32 %v1303_v31 }
 0xc1b   : > { %v1297_v33 = vpop.xlane.xlu2 %1296 }
 0xc1c   : > { %1710 = vrcp.f32 %v1297_v33 }
 0xc1d   : > { %v1380_v36 = vpop.permute.xlu1 %1379  ;;  %1712 = vrcp.f32 %v1294_v20 }
 0xc1e   : > { %v1709_v24 = vpop.eup %1708  ;;  %v1385_v39 = vand.u32 %v1380_v36, %v1968_v50 }
 0xc1f   : > { %v1311_v11 = vmul.f32 %v1709_v24, %v1291_v22 }
 0xc20   : > { %1394 = vmatpush.bf16.msrb.mxu3 %v1385_v39 }
 0xc21   : > { %v1315_v32 = vpack.c.bf16 %v1311_v11, %v1311_v11 }
 0xc22   : > { %v1711_v47 = vpop.eup %1710 }
 0xc23   : > { %v1300_v37 = vpop.xlane.xlu2 %1299  ;;  %1647 = vmatmul.msk.bf16.vlgmr.msrb.gmra.mxu3 %vm663_vm4, %v1315_v32  ;;  %v1713_v38 = vpop.eup %1712  ;;  %v1309_v40 = vmul.f32 %v1711_v47, %v1289_v55 }
 0xc24   : > { %1714 = vrcp.f32 %v1300_v37  ;;  %v1308_v41 = vmul.f32 %v1713_v38, %v1288_v0 }
 0xc25   : > { %v1313_v4 = vpack.c.bf16 %v1309_v40, %v1309_v40 }
 0xc26   : > { %v1312_v52 = vpack.c.bf16 %v1308_v41, %v1308_v41 }
 0xc2a   : > { %v1715_v54 = vpop.eup %1714  ;;  %v1338_v29 = vpop.permute.xlu0 %1337 }
 0xc2b   : > { %v1310_v42 = vmul.f32 %v1715_v54, %v1290_v16  ;;  %v1343_v43 = vand.u32 %v1338_v29, %v1968_v50  ;;  %v1317_v34 = vpop.permute.xlu2 %1316 }
 0xc2c   : > { %v1322_v30 = vand.u32 %v1317_v34, %v1968_v50 }
 0xc2d   : > { %v1314_v51 = vpack.c.bf16 %v1310_v42, %v1310_v42  ;;  %1352 = vmatpush.bf16.msrb.mxu1 %v1343_v43 }
 0xc2e   : > { %1331 = vmatpush.bf16.msrb.mxu0 %v1322_v30 }
 0xc2f   : > { %1646 = vmatmul.msk.bf16.vlgmr.msrb.gmra.mxu2 %vm663_vm4, %v1314_v51 }
 0xc30   : > { %1645 = vmatmul.msk.bf16.vlgmr.msrb.gmra.mxu1 %vm663_vm4, %v1313_v4 }
 0xc31   : > { %1644 = vmatmul.msk.bf16.vlgmr.msrb.gmra.mxu0 %vm663_vm4, %v1312_v52 }
 0xca6   : > { %v1396_v53 = vpop.f32.mrf.mxu3 }
 0xca7   : > { %v1407_v60 = vmul.f32 0.01, %v1396_v53  ;;  %vm1403_vm4 = vcmp.gt.f32.partialorder %v1396_v53, 0.0 }
 0xca9   : > { %v1411_v3 = vsel %vm1403_vm4, %v1396_v53, %v1407_v60 }
 0xcaa   : > { %v2281_v15 = vadd.f32 %v1411_v3, %v2060_v5 }
 0xcac   : > { %v1429_v9 = vsel %vm768_vm6, %v2281_v15, 0.0  ;;  %v1439_v18 = vmul.f32 %v2281_v15, %v2281_v15 }
 0xcad   : > { %v1354_v8 = vpop.f32.mrf.mxu1 }
 0xcae   : > { %vm1401_vm1 = vcmp.gt.f32.partialorder %v1354_v8, 0.0  ;;  %v1405_v17 = vmul.f32 0.01, %v1354_v8  ;;  %v1333_v57 = vpop.f32.mrf.mxu0  ;;  %v1398_v44 = vpop.f32.mrf.mxu3  ;;  %v1449_v5 = vsel %vm768_vm6, %v1439_v18, 0.0 }
 0xcaf   : > { %vm1400_vm8 = vcmp.gt.f32.partialorder %v1333_v57, 0.0  ;;  %v1404_v2 = vmul.f32 0.01, %v1333_v57 }
 0xcb0   : > { %v1409_v50 = vsel %vm1401_vm1, %v1354_v8, %v1405_v17 }
 0xcb1   : > { %v2261_v58 = vadd.f32 %v1409_v50, %v2070_v26  ;;  %v1408_v59 = vsel %vm1400_vm8, %v1333_v57, %v1404_v2 }
 0xcb2   : > { %v2264_v45 = vadd.f32 %v1408_v59, %v2075_v28  ;;  %v1375_v61 = vpop.f32.mrf.mxu2 }
 0xcb3   : > { %vm1402_vm9 = vcmp.gt.f32.partialorder %v1375_v61, 0.0  ;;  %v1406_v48 = vmul.f32 0.01, %v1375_v61  ;;  %v1423_v56 = vsel %vm768_vm6, %v2261_v58, 0.0  ;;  %v1437_v7 = vmul.f32 %v2261_v58, %v2261_v58 }
 0xcb4   : > { %1424 = vadd.xlane.f32.xlu0 %v1423_v56  ;;  %v1420_v62 = vsel %vm768_vm6, %v2264_v45, 0.0  ;;  %v1436_v10 = vmul.f32 %v2264_v45, %v2264_v45 }
 0xcb5   : > { %v1410_v0 = vsel %vm1402_vm9, %v1375_v61, %v1406_v48  ;;  %1421 = vadd.xlane.f32.xlu1 %v1420_v62  ;;  %v1356_v6 = vpop.f32.mrf.mxu1  ;;  %v1443_v14 = vsel %vm768_vm6, %v1437_v7, 0.0 }
 0xcb6   : > { %v2271_v26 = vadd.f32 %v1410_v0, %v2047_v27  ;;  %v1335_v28 = vpop.f32.mrf.mxu0  ;;  %v1440_v27 = vsel %vm768_vm6, %v1436_v10, 0.0  ;;  %v1672_v0 = vld [vmem:[%s2335_s3 + $0x1] ss:$0 sm:$0xff] }
 0xcb8   : > { %v1426_v35 = vsel %vm768_vm6, %v2271_v26, 0.0  ;;  %v1438_v46 = vmul.f32 %v2271_v26, %v2271_v26 }
 0xcb9   : > { %1427 = vadd.xlane.f32.xlu2 %v1426_v35 }
 0xcba   : > { %v1377_v12 = vpop.f32.mrf.mxu2  ;;  %v1446_v21 = vsel %vm768_vm6, %v1438_v46, 0.0 }
 0xcbc   : > { %1444 = vadd.xlane.f32.xlu0 %v1443_v14 }
 0xcbd   : > { %1441 = vadd.xlane.f32.xlu1 %v1440_v27 }
 0xcc1   : > { %1430 = vadd.xlane.f32.xlu2 %v1429_v9 }
 0xcc5   : > { %1447 = vadd.xlane.f32.xlu1 %v1446_v21 }
 0xcc9   : > { %1450 = vadd.xlane.f32.xlu2 %v1449_v5 }
 0xd27   : > { %v1425_v19 = vpop.xlane.xlu0 %1424 }
 0xd28   : > { %v1422_v22 = vpop.xlane.xlu1 %1421  ;;  %v1433_v13 = vmul.f32 %v1425_v19, %v2026_v1 }
 0xd29   : > { %v1432_v55 = vmul.f32 %v1422_v22, %v2026_v1 }
 0xd2a   : > { %v1457_v25 = vmul.f32 %v1433_v13, %v1433_v13  ;;  %v1469_v60 = vsub.f32 %v2261_v58, %v1433_v13  ;;  %v1673_v58 = vld [vmem:[%s2336_s4 + $0x1] ss:$0 sm:$0xff] }
 0xd2b   : > { %v1456_v20 = vmul.f32 %v1432_v55, %v1432_v55  ;;  %v1468_v7 = vsub.f32 %v2264_v45, %v1432_v55 }
 0xd2c   : > { %v1428_v23 = vpop.xlane.xlu2 %1427 }
 0xd2d   : > { %v2297_v11 = vmul.f32 %v1428_v23, %v2026_v1 }
 0xd2f   : > { %v1445_v63 = vpop.xlane.xlu0 %1444  ;;  %v1458_v54 = vmul.f32 %v2297_v11, %v2297_v11  ;;  %v1470_v55 = vsub.f32 %v2271_v26, %v2297_v11 }
 0xd30   : > { %v1453_v16 = vmul.f32 %v1445_v63, %v2026_v1  ;;  %v1442_v49 = vpop.xlane.xlu1 %1441 }
 0xd31   : > { %v1452_v31 = vmul.f32 %v1442_v49, %v2026_v1 }
 0xd32   : > { %v1461_v33 = vsub.f32 %v1453_v16, %v1457_v25 }
 0xd33   : > { %v1460_v36 = vsub.f32 %v1452_v31, %v1456_v20 }
 0xd34   : > { %v1465_v24 = vmax.f32 %v1461_v33, 0.0  ;;  %v1431_v39 = vpop.xlane.xlu2 %1430 }
 0xd35   : > { %v1464_v32 = vmax.f32 %v1460_v36, 0.0  ;;  %v2302_v40 = vmul.f32 %v1431_v39, %v2026_v1 }
 0xd36   : > { %v1473_v37 = vadd.f32 1e-05, %v1465_v24 }
 0xd37   : > { %v1472_v47 = vadd.f32 1e-05, %v1464_v32  ;;  %v1459_v43 = vmul.f32 %v2302_v40, %v2302_v40  ;;  %v1471_v20 = vsub.f32 %v2281_v15, %v2302_v40 }
 0xd38   : > { %1716 = vrsqrt.f32 %v1473_v37  ;;  %v1448_v38 = vpop.xlane.xlu1 %1447  ;;  %vm1492_vm13 = vweird.f32 %v1473_v37 }
 0xd39   : > { %1718 = vrsqrt.f32 %v1472_v47  ;;  %v1454_v29 = vmul.f32 %v1448_v38, %v2026_v1  ;;  %vm1482_vm14 = vweird.f32 %v1472_v47 }
 0xd3b   : > { %v1462_v41 = vsub.f32 %v1454_v29, %v1458_v54 }
 0xd3c   : > { %v1451_v42 = vpop.xlane.xlu2 %1450 }
 0xd3d   : > { %v1466_v34 = vmax.f32 %v1462_v41, 0.0  ;;  %v1455_v30 = vmul.f32 %v1451_v42, %v2026_v1 }
 0xd3e   : > { %v1717_v51 = vpop.eup %1716 }
 0xd3f   : > { %v1719_v4 = vpop.eup %1718  ;;  %v1487_v52 = vmul.f32 %v1717_v51, %v1473_v37  ;;  %v1474_v53 = vadd.f32 1e-05, %v1466_v34  ;;  %v1463_v8 = vsub.f32 %v1455_v30, %v1459_v43  ;;  %vm1493_vm2 = vweird.f32 %v1717_v51 }
 0xd40   : > { %v1477_v17 = vmul.f32 %v1719_v4, %v1472_v47  ;;  %vm1483_vm12 = vweird.f32 %v1719_v4  ;;  %vm1494_vm3 = vmor %vm1492_vm13, %vm1493_vm2 }
 0xd41   : > { %v1488_v57 = vmul.f32 %v1717_v51, %v1487_v52  ;;  %1720 = vrsqrt.f32 %v1474_v53  ;;  %v1467_v44 = vmax.f32 %v1463_v8, 0.0  ;;  %vm1484_vm0 = vmor %vm1482_vm14, %vm1483_vm12  ;;  %vm1502_vm7 = vweird.f32 %v1474_v53 }
 0xd42   : > { %v1478_v2 = vmul.f32 %v1719_v4, %v1477_v17 }
 0xd43   : > { %v1489_v50 = vmul.f32 0.5, %v1488_v57  ;;  %v1475_v59 = vadd.f32 1e-05, %v1467_v44 }
 0xd44   : > { %v1479_v61 = vmul.f32 0.5, %v1478_v2 }
 0xd45   : > { %v1490_v48 = vsub.f32 1.5, %v1489_v50  ;;  %1722 = vrsqrt.f32 %v1475_v59  ;;  %vm1512_vm11 = vweird.f32 %v1475_v59 }
 0xd46   : > { %v1480_v56 = vsub.f32 1.5, %v1479_v61 }
 0xd47   : > { %v1721_v62 = vpop.eup %1720  ;;  %v1491_v1 = vmul.f32 %v1717_v51, %v1490_v48 }
 0xd48   : > { %v1481_v6 = vmul.f32 %v1719_v4, %v1480_v56  ;;  %v1497_v28 = vmul.f32 %v1721_v62, %v1474_v53  ;;  %vm1503_vm5 = vweird.f32 %v1721_v62 }
 0xd49   : > { %v1495_v35 = vsel %vm1494_vm3, %v1717_v51, %v1491_v1  ;;  %vm1504_vm10 = vmor %vm1502_vm7, %vm1503_vm5 }
 0xd4a   : > { %v1517_v10 = vmul.f32 %v1495_v35, %v1469_v60  ;;  %v1485_v3 = vsel %vm1484_vm0, %v1719_v4, %v1481_v6  ;;  %v1498_v12 = vmul.f32 %v1721_v62, %v1497_v28 }
 0xd4b   : > { %v1723_v14 = vpop.eup %1722  ;;  %v1516_v27 = vmul.f32 %v1485_v3, %v1468_v7 }
 0xd4c   : > { %v1524_v9 = vmul.f32 %v1672_v0, %v1517_v10  ;;  %v1499_v46 = vmul.f32 0.5, %v1498_v12  ;;  %v1507_v21 = vmul.f32 %v1723_v14, %v1475_v59  ;;  %vm1513_vm15 = vweird.f32 %v1723_v14 }
 0xd4d   : > { %v1523_v18 = vmul.f32 %v1672_v0, %v1516_v27  ;;  %vm1514_vm1 = vmor %vm1512_vm11, %vm1513_vm15 }
 0xd4e   : > { %v1500_v45 = vsub.f32 1.5, %v1499_v46  ;;  %v1508_v5 = vmul.f32 %v1723_v14, %v1507_v21  ;;  %v1531_v22 = vadd.f32 %v1673_v58, %v1524_v9 }
 0xd4f   : > { %v1530_v19 = vadd.f32 %v1673_v58, %v1523_v18 }
 0xd50   : > { %v1501_v13 = vmul.f32 %v1721_v62, %v1500_v45  ;;  %v1509_v23 = vmul.f32 0.5, %v1508_v5  ;;  %1535 = vst.msk [vmem:[%s226_s27 + $0x4] sm:$0x7] %vm768_vm6, %v1531_v22 }
 0xd51   : > { %1534 = vst.msk [vmem:[%s226_s27] sm:$0x7] %vm768_vm6, %v1530_v19 }
 0xd52   : > { %v1505_v63 = vsel %vm1504_vm10, %v1721_v62, %v1501_v13  ;;  %v1510_v25 = vsub.f32 1.5, %v1509_v23 }
 0xd53   : > { %v1518_v16 = vmul.f32 %v1505_v63, %v1470_v55 }
 0xd54   : > { %v1511_v49 = vmul.f32 %v1723_v14, %v1510_v25 }
 0xd55   : > { %v1525_v31 = vmul.f32 %v1672_v0, %v1518_v16 }
 0xd56   : > { %v1515_v33 = vsel %vm1514_vm1, %v1723_v14, %v1511_v49 }
 0xd57   : > { %v1532_v36 = vadd.f32 %v1673_v58, %v1525_v31  ;;  %v1519_v24 = vmul.f32 %v1515_v33, %v1471_v20 }
 0xd59   : > { %1536 = vst.msk [vmem:[%s226_s27 + $0x8] sm:$0x7] %vm768_vm6, %v1532_v36  ;;  %v1526_v26 = vmul.f32 %v1672_v0, %v1519_v24 }
 0xd5b   : > { %v1533_v39 = vadd.f32 %v1673_v58, %v1526_v26 }
 0xd5d   : > { %1537 = vst.msk [vmem:[%s226_s27 + $0xc] sm:$0x7] %vm768_vm6, %v1533_v39 }
 0xd5e PF: > { %s15_s18 = sadd.s32 1, %s1730_s18  }
 0xd5f   : > { %p12_p4 = scmp.ge.s32.totalorder %s15_s18, 4  }
 0xd61   :  { %14 = sbr.rel (!%p12_p4) target bundleno = 1 (0x1), region = 74 }

</bundles_post_ra>
